<compile_context>
chip_gen: v5e
topology: v5e:2x2
jax: 0.10.0
libtpu: 0.0.40
codegen_flags: <defaults>
</compile_context>

<pallas_src>
import functools

import jax
import jax.numpy as jnp
from jax import lax
from jax.experimental import pallas as pl
from jax.experimental.pallas import tpu as pltpu

EPS = 1e-5


def _resblock_kernel(x_ref, wb1_ref, wb2_ref, pmat1_ref, pmat2_ref,
                     g1s_ref, b1s_ref, g2_ref, b2_ref,
                     out_ref, xpad_ref, h1pad_ref, *, width):
    """All refs live in VMEM.  Lane layout of every activation is lane = w*C + c.

    x_ref     : (N, H, W*Cin)           input, compute dtype
    wb1_ref   : (3, W*Cin, 2*W*Cout)    row-banded conv1 weights; the last W*Cout
                                        output lanes are the fused 1x1 shortcut
    wb2_ref   : (3, W*Cout, W*Cout)     row-banded conv2 weights
    pmat1_ref : (2*W*Cout, 2*W*Cout)    0/1 channel-group matrix (conv1 + shortcut)
    pmat2_ref : (W*Cout, W*Cout)        0/1 channel-group matrix (conv2)
    g1s/b1s   : (1, 2*W*Cout)           [gamma1 | gamma_s], [beta1 | beta_s] on lanes
    g2/b2     : (1, W*Cout)             BN2 gamma/beta on lanes
    out_ref   : (N*H, W*Cout)           f32 output
    xpad_ref  : (N, H+2, W*Cin)         scratch: H-padded staging of x
    h1pad_ref : (N, H+2, W*Cout)        scratch: H-padded staging of relu(bn1(conv1))
    """
    N, Hp, WCin = xpad_ref.shape
    H = Hp - 2
    WCout = wb2_ref.shape[-1]
    NH = N * H
    inv_m = 1.0 / (N * H * width)        # BN population size (training-mode stats)
    cdt = xpad_ref.dtype

    def bn(v, pmat, g_l, b_l):
        # v: (NH, L) f32.  Single-pass batch statistics, biased variance.
        # Lanes l, l' carry the same BN channel iff pmat[l, l'] == 1; one constant
        # matmul both sums the stats over the W lane-copies of each channel and
        # re-broadcasts them back onto the lane layout (no sub-vreg reshapes).
        s1 = jnp.sum(v, axis=0, keepdims=True)             # (1, L)
        s2 = jnp.sum(v * v, axis=0, keepdims=True)         # (1, L)
        stats = jnp.concatenate([s1, s2], axis=0)          # (2, L)
        red = jnp.dot(stats, pmat, preferred_element_type=jnp.float32) * inv_m
        mu = red[0:1]
        var = red[1:2] - mu * mu
        scale = g_l * lax.rsqrt(var + EPS)
        shift = b_l - mu * scale
        return v * scale + shift

    # ---- stage x into an H-padded buffer; zero only the two halo rows --------
    xpad_ref[:, 0:1, :] = jnp.zeros((N, 1, WCin), cdt)
    xpad_ref[:, H + 1:H + 2, :] = jnp.zeros((N, 1, WCin), cdt)
    xpad_ref[:, 1:H + 1, :] = x_ref[...]

    # ---- conv1 (3x3, pad=1) + fused 1x1 shortcut: 3 row-tap matmuls ----------
    acc1 = (jnp.dot(xpad_ref[:, 0:H, :].reshape(NH, WCin), wb1_ref[0],
                    preferred_element_type=jnp.float32)
            + jnp.dot(xpad_ref[:, 1:H + 1, :].reshape(NH, WCin), wb1_ref[1],
                      preferred_element_type=jnp.float32)
            + jnp.dot(xpad_ref[:, 2:H + 2, :].reshape(NH, WCin), wb1_ref[2],
                      preferred_element_type=jnp.float32))      # (NH, 2*WCout)

    # ---- joint BN over conv1 output and shortcut (per-half stats via pmat1) --
    bn1s = bn(acc1, pmat1_ref[...], g1s_ref[...], b1s_ref[...])
    h1 = jnp.maximum(bn1s[:, :WCout], 0.0)                      # ReLU on left only
    residual = bn1s[:, WCout:]                                   # BNs(conv1x1(x))

    # ---- stage h1 into an H-padded buffer (halo rows only) -------------------
    h1pad_ref[:, 0:1, :] = jnp.zeros((N, 1, WCout), cdt)
    h1pad_ref[:, H + 1:H + 2, :] = jnp.zeros((N, 1, WCout), cdt)
    h1pad_ref[:, 1:H + 1, :] = h1.reshape(N, H, WCout).astype(cdt)

    # ---- conv2 (3x3, pad=1): 3 row-tap matmuls, K = W*Cout -------------------
    acc2 = (jnp.dot(h1pad_ref[:, 0:H, :].reshape(NH, WCout), wb2_ref[0],
                    preferred_element_type=jnp.float32)
            + jnp.dot(h1pad_ref[:, 1:H + 1, :].reshape(NH, WCout), wb2_ref[1],
                      preferred_element_type=jnp.float32)
            + jnp.dot(h1pad_ref[:, 2:H + 2, :].reshape(NH, WCout), wb2_ref[2],
                      preferred_element_type=jnp.float32))      # (NH, WCout)

    left = bn(acc2, pmat2_ref[...], g2_ref[...], b2_ref[...])
    out_ref[...] = jnp.maximum(left + residual, 0.0).astype(out_ref.dtype)


# ----------------------------- weight / const preprocessing ---------------------

def _band_conv3x3(w_oihw, width):
    """Torch (Cout, Cin, 3, 3) conv weight -> (3, W*Cin, W*Cout) row-banded matmul
    weights: wb[dy, w_in*Cin + i, w_out*Cout + o] = w[o, i, dy, w_in - w_out + 1]
    (zero outside the band).  A padding=1 3x3 conv then becomes 3 matmuls over
    the lane-flattened (w, channel) axis; width padding is baked into the band."""
    cout, cin = w_oihw.shape[0], w_oihw.shape[1]
    hwio = jnp.transpose(w_oihw, (2, 3, 1, 0))                  # (dy, dx, i, o)
    w_in = jnp.arange(width)[:, None]
    w_out = jnp.arange(width)[None, :]
    dx = w_in - w_out + 1                                       # (W, W)
    valid = ((dx >= 0) & (dx <= 2)).astype(w_oihw.dtype)
    band = hwio[:, jnp.clip(dx, 0, 2)] * valid[None, :, :, None, None]
    # (3, w_in, w_out, i, o) -> (3, w_in, i, w_out, o) -> (3, W*Cin, W*Cout)
    return band.transpose(0, 1, 3, 2, 4).reshape(3, width * cin, width * cout)


def _blockdiag_conv1x1(w_oihw, width):
    """Torch (Cout, Cin, 1, 1) conv weight -> (W*Cin, W*Cout) block-diagonal
    matmul weight on the lane-flattened (w, channel) axis."""
    ws_io = jnp.transpose(w_oihw[:, :, 0, 0], (1, 0))           # (Cin, Cout)
    cin, cout = ws_io.shape
    eye = jnp.eye(width, dtype=ws_io.dtype)
    blk = eye[:, None, :, None] * ws_io[None, :, None, :]       # (W, Cin, W, Cout)
    return blk.reshape(width * cin, width * cout)


def _group_matrix(lanes, half_size, cout):
    """0/1 matrix: pmat[l, l'] = 1 iff lanes l, l' carry the same BN channel
    (same channel index modulo cout AND same half of the lane range)."""
    idx = jnp.arange(lanes)
    ch = idx % cout
    half = idx // half_size
    same = (ch[:, None] == ch[None, :]) & (half[:, None] == half[None, :])
    return same.astype(jnp.float32)


# ----------------------------------- wrapper ------------------------------------

def resblock_forward(x_nchw, params, compute_dtype=jnp.float32):
    """x_nchw: (N, Cin, H, W), as the PyTorch module expects.  Returns NCHW f32.

    compute_dtype=jnp.bfloat16 feeds the MXU in bf16 (recommended on v6e/v7x);
    accumulation and all BN/ReLU math stay in f32.
    """
    N, Cin, H, W = x_nchw.shape
    Cout = params["w1"].shape[0]
    WCin, WCout = W * Cin, W * Cout

    # NCHW -> (N, H, W*Cin): channels fastest on the lane axis.
    # TODO(synk): this boundary transpose (and the inverse one below) is still a
    # separate XLA HBM pass; fold it into the kernel load/store if it matters.
    x = jnp.transpose(x_nchw, (0, 2, 3, 1)).reshape(N, H, WCin).astype(compute_dtype)

    # Row-banded conv weights; fuse the 1x1 shortcut into conv1's centre row-tap
    # as W*Cout extra output lanes, so one matmul set yields conv1 + shortcut.
    wb1 = _band_conv3x3(params["w1"].astype(jnp.float32), W)
    wsb = _blockdiag_conv1x1(params["ws"].astype(jnp.float32), W)
    wb1e = jnp.concatenate(
        [wb1, jnp.stack([jnp.zeros_like(wsb), wsb, jnp.zeros_like(wsb)])],
        axis=-1).astype(compute_dtype)                          # (3, WCin, 2*WCout)
    wb2 = _band_conv3x3(params["w2"].astype(jnp.float32), W).astype(compute_dtype)

    # Channel-group matrices for the in-kernel BN stats matmul (precomputed so
    # the kernel does no iota/mod work); kept in f32.
    pmat1 = _group_matrix(2 * WCout, WCout, Cout)               # conv1 + shortcut
    pmat2 = _group_matrix(WCout, WCout, Cout)                   # conv2

    # BN gamma/beta pre-tiled onto the (w, c) lane layout, kept in f32.
    def lane_tiled(p):
        return jnp.tile(p.reshape(1, Cout).astype(jnp.float32), (1, W))
    g1s = jnp.concatenate([lane_tiled(params["g1"]), lane_tiled(params["gs"])], -1)
    b1s = jnp.concatenate([lane_tiled(params["b1"]), lane_tiled(params["bs"])], -1)
    g2, b2 = lane_tiled(params["g2"]), lane_tiled(params["b2"])

    vmem = lambda: pl.BlockSpec(memory_space=pltpu.MemorySpace.VMEM)
    # TODO(synk): for shapes too large for VMEM (notably v7x's 64 MiB), tile the
    # grid over N/H with a 1-row halo and accumulate BN statistics across tiles.
    out2d = pl.pallas_call(
        functools.partial(_resblock_kernel, width=W),
        out_shape=jax.ShapeDtypeStruct((N * H, WCout), jnp.float32),
        in_specs=[vmem() for _ in range(9)],
        out_specs=vmem(),
        scratch_shapes=[pltpu.VMEM((N, H + 2, WCin), compute_dtype),
                        pltpu.VMEM((N, H + 2, WCout), compute_dtype)],
        compiler_params=pltpu.CompilerParams(vmem_limit_bytes=32 * 1024 * 1024),
    )(x, wb1e, wb2, pmat1, pmat2, g1s, b1s, g2, b2)

    out = out2d.reshape(N, H, W, Cout)
    return jnp.transpose(out, (0, 3, 1, 2))                     # back to NCHW


# --------------------------- params / pure-JAX reference -------------------------

def init_params(key, in_channel, out_channel):
    ks = jax.random.split(key, 9)
    f32 = jnp.float32
    return {
        # torch layouts: conv (O, I, kh, kw), BN params (C,)
        "w1": 0.1 * jax.random.normal(ks[0], (out_channel, in_channel, 3, 3), f32),
        "w2": 0.1 * jax.random.normal(ks[1], (out_channel, out_channel, 3, 3), f32),
        "ws": 0.1 * jax.random.normal(ks[2], (out_channel, in_channel, 1, 1), f32),
        "g1": 1.0 + 0.1 * jax.random.normal(ks[3], (out_channel,), f32),
        "b1": 0.1 * jax.random.normal(ks[4], (out_channel,), f32),
        "g2": 1.0 + 0.1 * jax.random.normal(ks[5], (out_channel,), f32),
        "b2": 0.1 * jax.random.normal(ks[6], (out_channel,), f32),
        "gs": 1.0 + 0.1 * jax.random.normal(ks[7], (out_channel,), f32),
        "bs": 0.1 * jax.random.normal(ks[8], (out_channel,), f32),
    }


def ref_forward(x_nchw, params):
    """Pure-JAX NCHW reference mirroring the PyTorch forward (training-mode BN)."""
    def conv(v, w, pad):
        return lax.conv_general_dilated(
            v, w, (1, 1), ((pad, pad), (pad, pad)),
            dimension_numbers=("NCHW", "OIHW", "NCHW"))

    def bn(v, g, b):
        mu = jnp.mean(v, axis=(0, 2, 3), keepdims=True)
        var = jnp.mean(jnp.square(v - mu), axis=(0, 2, 3), keepdims=True)
        return (v - mu) * lax.rsqrt(var + EPS) * g.reshape(1, -1, 1, 1) \
            + b.reshape(1, -1, 1, 1)

    x = x_nchw.astype(jnp.float32)
    h1 = jnp.maximum(bn(conv(x, params["w1"], 1), params["g1"], params["b1"]), 0.0)
    left = bn(conv(h1, params["w2"], 1), params["g2"], params["b2"])
    res = bn(conv(x, params["ws"], 0), params["gs"], params["bs"])
    return jnp.maximum(left + res, 0.0)


if __name__ == "__main__":
    key = jax.random.PRNGKey(0)
    k_x, k_p = jax.random.split(key)

    N, Cin, Cout, H, W = 2, 4, 8, 16, 16
    x = jax.random.normal(k_x, (N, Cin, H, W), jnp.float32)     # NCHW, like torch
    params = init_params(k_p, Cin, Cout)

    ref = jax.block_until_ready(ref_forward(x, params))

    # f32 MXU path (v5e-safe), tight tolerance.
    out = jax.block_until_ready(resblock_forward(x, params))
    assert out.shape == (N, Cout, H, W)
    assert bool(jnp.all(jnp.isfinite(out)))
    assert jnp.allclose(out, ref, rtol=1e-3, atol=1e-3), \
        f"f32 max abs err {jnp.max(jnp.abs(out - ref))}"

    # bf16 MXU path (v6e/v7x recommendation); accumulation and BN stay in f32.
    out_bf16 = jax.block_until_ready(
        resblock_forward(x, params, compute_dtype=jnp.bfloat16))
    assert jnp.allclose(out_bf16, ref, rtol=5e-2, atol=5e-2), \
        f"bf16 max abs err {jnp.max(jnp.abs(out_bf16 - ref))}"

    print("KERNEL_OK")
</pallas_src>

<mosaic_0001>
module attributes {stable_mosaic.version = 11 : i64} {
  func.func @_resblock_kernel(%arg0: memref<2x16x64xf32, #tpu.memory_space<vmem>>, %arg1: memref<3x64x256xf32, #tpu.memory_space<vmem>>, %arg2: memref<3x128x128xf32, #tpu.memory_space<vmem>>, %arg3: memref<256x256xf32, #tpu.memory_space<vmem>>, %arg4: memref<128x128xf32, #tpu.memory_space<vmem>>, %arg5: memref<1x256xf32, #tpu.memory_space<vmem>>, %arg6: memref<1x256xf32, #tpu.memory_space<vmem>>, %arg7: memref<1x128xf32, #tpu.memory_space<vmem>>, %arg8: memref<1x128xf32, #tpu.memory_space<vmem>>, %arg9: memref<32x128xf32, #tpu.memory_space<vmem>>, %arg10: memref<2x18x64xf32, #tpu.memory_space<vmem>>, %arg11: memref<2x18x128xf32, #tpu.memory_space<vmem>>) attributes {dimension_semantics = [], scalar_prefetch = 0 : i64, scratch_operands = 2 : i64, tpu.core_type = #tpu.core_type<tc>} {
    %cst = arith.constant 0.000000e+00 : f32
    %0 = vector.broadcast %cst : f32 to vector<2x1x64xf32>
    %c0 = arith.constant 0 : index
    %c0_0 = arith.constant 0 : index
    %c0_1 = arith.constant 0 : index
    %1 = vector.load %arg10[%c0, %c0_0, %c0_1] : memref<2x18x64xf32, #tpu.memory_space<vmem>>, vector<2x1x64xf32>
    tpu.vector_store %arg10[%c0, %c0_0, %c0_1], %0 {strides = array<i32>} : memref<2x18x64xf32, #tpu.memory_space<vmem>>, vector<2x1x64xf32>,
    %cst_2 = arith.constant 0.000000e+00 : f32
    %2 = vector.broadcast %cst_2 : f32 to vector<2x1x64xf32>
    %c0_3 = arith.constant 0 : index
    %c17 = arith.constant 17 : index
    %c0_4 = arith.constant 0 : index
    %3 = vector.load %arg10[%c0_3, %c17, %c0_4] : memref<2x18x64xf32, #tpu.memory_space<vmem>>, vector<2x1x64xf32>
    tpu.vector_store %arg10[%c0_3, %c17, %c0_4], %2 {strides = array<i32>} : memref<2x18x64xf32, #tpu.memory_space<vmem>>, vector<2x1x64xf32>,
    %c0_5 = arith.constant 0 : index
    %c0_6 = arith.constant 0 : index
    %c0_7 = arith.constant 0 : index
    %4 = vector.load %arg0[%c0_5, %c0_6, %c0_7] : memref<2x16x64xf32, #tpu.memory_space<vmem>>, vector<2x16x64xf32>
    %c0_8 = arith.constant 0 : index
    %c1 = arith.constant 1 : index
    %c0_9 = arith.constant 0 : index
    %5 = vector.load %arg10[%c0_8, %c1, %c0_9] : memref<2x18x64xf32, #tpu.memory_space<vmem>>, vector<2x16x64xf32>
    tpu.vector_store %arg10[%c0_8, %c1, %c0_9], %4 {strides = array<i32>} : memref<2x18x64xf32, #tpu.memory_space<vmem>>, vector<2x16x64xf32>,
    %c0_10 = arith.constant 0 : index
    %c0_11 = arith.constant 0 : index
    %c0_12 = arith.constant 0 : index
    %6 = vector.load %arg10[%c0_10, %c0_11, %c0_12] : memref<2x18x64xf32, #tpu.memory_space<vmem>>, vector<2x16x64xf32>
    %7 = vector.shape_cast %6 : vector<2x16x64xf32> to vector<32x64xf32>
    %c0_13 = arith.constant 0 : index
    %c0_14 = arith.constant 0 : index
    %c0_15 = arith.constant 0 : index
    %8 = vector.load %arg1[%c0_13, %c0_14, %c0_15] : memref<3x64x256xf32, #tpu.memory_space<vmem>>, vector<1x64x256xf32>
    %9 = vector.shape_cast %8 : vector<1x64x256xf32> to vector<64x256xf32>
    %cst_16 = arith.constant dense<0.000000e+00> : vector<32x256xf32>
    %10 = tpu.matmul %7, %9, %cst_16 {dimension_numbers = #tpu.dot_dimension_numbers<[1], [0], [0], [1], [0, 0, 1, 1], [], []>} : vector<32x64xf32>, vector<64x256xf32>, vector<32x256xf32> -> vector<32x256xf32>
    %c0_17 = arith.constant 0 : index
    %c1_18 = arith.constant 1 : index
    %c0_19 = arith.constant 0 : index
    %11 = vector.load %arg10[%c0_17, %c1_18, %c0_19] : memref<2x18x64xf32, #tpu.memory_space<vmem>>, vector<2x16x64xf32>
    %12 = vector.shape_cast %11 : vector<2x16x64xf32> to vector<32x64xf32>
    %c1_20 = arith.constant 1 : index
    %c0_21 = arith.constant 0 : index
    %c0_22 = arith.constant 0 : index
    %13 = vector.load %arg1[%c1_20, %c0_21, %c0_22] : memref<3x64x256xf32, #tpu.memory_space<vmem>>, vector<1x64x256xf32>
    %14 = vector.shape_cast %13 : vector<1x64x256xf32> to vector<64x256xf32>
    %cst_23 = arith.constant dense<0.000000e+00> : vector<32x256xf32>
    %15 = tpu.matmul %12, %14, %cst_23 {dimension_numbers = #tpu.dot_dimension_numbers<[1], [0], [0], [1], [0, 0, 1, 1], [], []>} : vector<32x64xf32>, vector<64x256xf32>, vector<32x256xf32> -> vector<32x256xf32>
    %16 = arith.addf %10, %15 : vector<32x256xf32>
    %c0_24 = arith.constant 0 : index
    %c2 = arith.constant 2 : index
    %c0_25 = arith.constant 0 : index
    %17 = vector.load %arg10[%c0_24, %c2, %c0_25] : memref<2x18x64xf32, #tpu.memory_space<vmem>>, vector<2x16x64xf32>
    %18 = vector.shape_cast %17 : vector<2x16x64xf32> to vector<32x64xf32>
    %c2_26 = arith.constant 2 : index
    %c0_27 = arith.constant 0 : index
    %c0_28 = arith.constant 0 : index
    %19 = vector.load %arg1[%c2_26, %c0_27, %c0_28] : memref<3x64x256xf32, #tpu.memory_space<vmem>>, vector<1x64x256xf32>
    %20 = vector.shape_cast %19 : vector<1x64x256xf32> to vector<64x256xf32>
    %cst_29 = arith.constant dense<0.000000e+00> : vector<32x256xf32>
    %21 = tpu.matmul %18, %20, %cst_29 {dimension_numbers = #tpu.dot_dimension_numbers<[1], [0], [0], [1], [0, 0, 1, 1], [], []>} : vector<32x64xf32>, vector<64x256xf32>, vector<32x256xf32> -> vector<32x256xf32>
    %22 = arith.addf %16, %21 : vector<32x256xf32>
    %c0_30 = arith.constant 0 : index
    %c0_31 = arith.constant 0 : index
    %23 = vector.load %arg3[%c0_30, %c0_31] : memref<256x256xf32, #tpu.memory_space<vmem>>, vector<256x256xf32>
    %c0_32 = arith.constant 0 : index
    %c0_33 = arith.constant 0 : index
    %24 = vector.load %arg5[%c0_32, %c0_33] : memref<1x256xf32, #tpu.memory_space<vmem>>, vector<1x256xf32>
    %c0_34 = arith.constant 0 : index
    %c0_35 = arith.constant 0 : index
    %25 = vector.load %arg6[%c0_34, %c0_35] : memref<1x256xf32, #tpu.memory_space<vmem>>, vector<1x256xf32>
    %cst_36 = arith.constant dense<0.000000e+00> : vector<256xf32>
    %26 = vector.multi_reduction <add>, %22, %cst_36 [0] : vector<32x256xf32> to vector<256xf32>
    %27 = vector.shape_cast %26 : vector<256xf32> to vector<1x256xf32>
    %28 = arith.mulf %22, %22 : vector<32x256xf32>
    %cst_37 = arith.constant dense<0.000000e+00> : vector<256xf32>
    %29 = vector.multi_reduction <add>, %28, %cst_37 [0] : vector<32x256xf32> to vector<256xf32>
    %30 = vector.shape_cast %29 : vector<256xf32> to vector<1x256xf32>
    %31 = tpu.concatenate %27, %30 in 0 : vector<1x256xf32>, vector<1x256xf32> -> vector<2x256xf32>
    %cst_38 = arith.constant dense<0.000000e+00> : vector<2x256xf32>
    %32 = tpu.matmul %31, %23, %cst_38 {dimension_numbers = #tpu.dot_dimension_numbers<[1], [0], [0], [1], [0, 0, 1, 1], [], []>} : vector<2x256xf32>, vector<256x256xf32>, vector<2x256xf32> -> vector<2x256xf32>
    %cst_39 = arith.constant 0.001953125 : f32
    %33 = vector.broadcast %cst_39 : f32 to vector<2x256xf32>
    %34 = arith.mulf %32, %33 : vector<2x256xf32>
    %35 = vector.extract_strided_slice %34 {offsets = [0, 0], sizes = [1, 256], strides = [1, 1]} : vector<2x256xf32> to vector<1x256xf32>
    %36 = vector.extract_strided_slice %34 {offsets = [1, 0], sizes = [1, 256], strides = [1, 1]} : vector<2x256xf32> to vector<1x256xf32>
    %37 = arith.mulf %35, %35 : vector<1x256xf32>
    %38 = arith.subf %36, %37 : vector<1x256xf32>
    %cst_40 = arith.constant 9.99999974E-6 : f32
    %39 = vector.broadcast %cst_40 : f32 to vector<1x256xf32>
    %40 = arith.addf %38, %39 : vector<1x256xf32>
    %41 = math.rsqrt %40 : vector<1x256xf32>
    %42 = arith.mulf %24, %41 : vector<1x256xf32>
    %43 = arith.mulf %35, %42 : vector<1x256xf32>
    %44 = arith.subf %25, %43 : vector<1x256xf32>
    %45 = vector.broadcast %42 : vector<1x256xf32> to vector<32x256xf32>
    %46 = arith.mulf %22, %45 : vector<32x256xf32>
    %47 = vector.broadcast %44 : vector<1x256xf32> to vector<32x256xf32>
    %48 = arith.addf %46, %47 : vector<32x256xf32>
    %49 = vector.extract_strided_slice %48 {offsets = [0, 0], sizes = [32, 128], strides = [1, 1]} : vector<32x256xf32> to vector<32x128xf32>
    %cst_41 = arith.constant 0.000000e+00 : f32
    %50 = vector.broadcast %cst_41 : f32 to vector<32x128xf32>
    %51 = arith.maximumf %49, %50 : vector<32x128xf32>
    %52 = vector.extract_strided_slice %48 {offsets = [0, 128], sizes = [32, 128], strides = [1, 1]} : vector<32x256xf32> to vector<32x128xf32>
    %cst_42 = arith.constant 0.000000e+00 : f32
    %53 = vector.broadcast %cst_42 : f32 to vector<2x1x128xf32>
    %c0_43 = arith.constant 0 : index
    %c0_44 = arith.constant 0 : index
    %c0_45 = arith.constant 0 : index
    %54 = vector.load %arg11[%c0_43, %c0_44, %c0_45] : memref<2x18x128xf32, #tpu.memory_space<vmem>>, vector<2x1x128xf32>
    tpu.vector_store %arg11[%c0_43, %c0_44, %c0_45], %53 {strides = array<i32>} : memref<2x18x128xf32, #tpu.memory_space<vmem>>, vector<2x1x128xf32>,
    %cst_46 = arith.constant 0.000000e+00 : f32
    %55 = vector.broadcast %cst_46 : f32 to vector<2x1x128xf32>
    %c0_47 = arith.constant 0 : index
    %c17_48 = arith.constant 17 : index
    %c0_49 = arith.constant 0 : index
    %56 = vector.load %arg11[%c0_47, %c17_48, %c0_49] : memref<2x18x128xf32, #tpu.memory_space<vmem>>, vector<2x1x128xf32>
    tpu.vector_store %arg11[%c0_47, %c17_48, %c0_49], %55 {strides = array<i32>} : memref<2x18x128xf32, #tpu.memory_space<vmem>>, vector<2x1x128xf32>,
    %57 = vector.shape_cast %51 : vector<32x128xf32> to vector<2x16x128xf32>
    %c0_50 = arith.constant 0 : index
    %c1_51 = arith.constant 1 : index
    %c0_52 = arith.constant 0 : index
    %58 = vector.load %arg11[%c0_50, %c1_51, %c0_52] : memref<2x18x128xf32, #tpu.memory_space<vmem>>, vector<2x16x128xf32>
    tpu.vector_store %arg11[%c0_50, %c1_51, %c0_52], %57 {strides = array<i32>} : memref<2x18x128xf32, #tpu.memory_space<vmem>>, vector<2x16x128xf32>,
    %c0_53 = arith.constant 0 : index
    %c0_54 = arith.constant 0 : index
    %c0_55 = arith.constant 0 : index
    %59 = vector.load %arg11[%c0_53, %c0_54, %c0_55] : memref<2x18x128xf32, #tpu.memory_space<vmem>>, vector<2x16x128xf32>
    %60 = vector.shape_cast %59 : vector<2x16x128xf32> to vector<32x128xf32>
    %c0_56 = arith.constant 0 : index
    %c0_57 = arith.constant 0 : index
    %c0_58 = arith.constant 0 : index
    %61 = vector.load %arg2[%c0_56, %c0_57, %c0_58] : memref<3x128x128xf32, #tpu.memory_space<vmem>>, vector<1x128x128xf32>
    %62 = vector.shape_cast %61 : vector<1x128x128xf32> to vector<128x128xf32>
    %cst_59 = arith.constant dense<0.000000e+00> : vector<32x128xf32>
    %63 = tpu.matmul %60, %62, %cst_59 {dimension_numbers = #tpu.dot_dimension_numbers<[1], [0], [0], [1], [0, 0, 1, 1], [], []>} : vector<32x128xf32>, vector<128x128xf32>, vector<32x128xf32> -> vector<32x128xf32>
    %c0_60 = arith.constant 0 : index
    %c1_61 = arith.constant 1 : index
    %c0_62 = arith.constant 0 : index
    %64 = vector.load %arg11[%c0_60, %c1_61, %c0_62] : memref<2x18x128xf32, #tpu.memory_space<vmem>>, vector<2x16x128xf32>
    %65 = vector.shape_cast %64 : vector<2x16x128xf32> to vector<32x128xf32>
    %c1_63 = arith.constant 1 : index
    %c0_64 = arith.constant 0 : index
    %c0_65 = arith.constant 0 : index
    %66 = vector.load %arg2[%c1_63, %c0_64, %c0_65] : memref<3x128x128xf32, #tpu.memory_space<vmem>>, vector<1x128x128xf32>
    %67 = vector.shape_cast %66 : vector<1x128x128xf32> to vector<128x128xf32>
    %cst_66 = arith.constant dense<0.000000e+00> : vector<32x128xf32>
    %68 = tpu.matmul %65, %67, %cst_66 {dimension_numbers = #tpu.dot_dimension_numbers<[1], [0], [0], [1], [0, 0, 1, 1], [], []>} : vector<32x128xf32>, vector<128x128xf32>, vector<32x128xf32> -> vector<32x128xf32>
    %69 = arith.addf %63, %68 : vector<32x128xf32>
    %c0_67 = arith.constant 0 : index
    %c2_68 = arith.constant 2 : index
    %c0_69 = arith.constant 0 : index
    %70 = vector.load %arg11[%c0_67, %c2_68, %c0_69] : memref<2x18x128xf32, #tpu.memory_space<vmem>>, vector<2x16x128xf32>
    %71 = vector.shape_cast %70 : vector<2x16x128xf32> to vector<32x128xf32>
    %c2_70 = arith.constant 2 : index
    %c0_71 = arith.constant 0 : index
    %c0_72 = arith.constant 0 : index
    %72 = vector.load %arg2[%c2_70, %c0_71, %c0_72] : memref<3x128x128xf32, #tpu.memory_space<vmem>>, vector<1x128x128xf32>
    %73 = vector.shape_cast %72 : vector<1x128x128xf32> to vector<128x128xf32>
    %cst_73 = arith.constant dense<0.000000e+00> : vector<32x128xf32>
    %74 = tpu.matmul %71, %73, %cst_73 {dimension_numbers = #tpu.dot_dimension_numbers<[1], [0], [0], [1], [0, 0, 1, 1], [], []>} : vector<32x128xf32>, vector<128x128xf32>, vector<32x128xf32> -> vector<32x128xf32>
    %75 = arith.addf %69, %74 : vector<32x128xf32>
    %c0_74 = arith.constant 0 : index
    %c0_75 = arith.constant 0 : index
    %76 = vector.load %arg4[%c0_74, %c0_75] : memref<128x128xf32, #tpu.memory_space<vmem>>, vector<128x128xf32>
    %c0_76 = arith.constant 0 : index
    %c0_77 = arith.constant 0 : index
    %77 = vector.load %arg7[%c0_76, %c0_77] : memref<1x128xf32, #tpu.memory_space<vmem>>, vector<1x128xf32>
    %c0_78 = arith.constant 0 : index
    %c0_79 = arith.constant 0 : index
    %78 = vector.load %arg8[%c0_78, %c0_79] : memref<1x128xf32, #tpu.memory_space<vmem>>, vector<1x128xf32>
    %cst_80 = arith.constant dense<0.000000e+00> : vector<128xf32>
    %79 = vector.multi_reduction <add>, %75, %cst_80 [0] : vector<32x128xf32> to vector<128xf32>
    %80 = vector.shape_cast %79 : vector<128xf32> to vector<1x128xf32>
    %81 = arith.mulf %75, %75 : vector<32x128xf32>
    %cst_81 = arith.constant dense<0.000000e+00> : vector<128xf32>
    %82 = vector.multi_reduction <add>, %81, %cst_81 [0] : vector<32x128xf32> to vector<128xf32>
    %83 = vector.shape_cast %82 : vector<128xf32> to vector<1x128xf32>
    %84 = tpu.concatenate %80, %83 in 0 : vector<1x128xf32>, vector<1x128xf32> -> vector<2x128xf32>
    %cst_82 = arith.constant dense<0.000000e+00> : vector<2x128xf32>
    %85 = tpu.matmul %84, %76, %cst_82 {dimension_numbers = #tpu.dot_dimension_numbers<[1], [0], [0], [1], [0, 0, 1, 1], [], []>} : vector<2x128xf32>, vector<128x128xf32>, vector<2x128xf32> -> vector<2x128xf32>
    %cst_83 = arith.constant 0.001953125 : f32
    %86 = vector.broadcast %cst_83 : f32 to vector<2x128xf32>
    %87 = arith.mulf %85, %86 : vector<2x128xf32>
    %88 = vector.extract_strided_slice %87 {offsets = [0, 0], sizes = [1, 128], strides = [1, 1]} : vector<2x128xf32> to vector<1x128xf32>
    %89 = vector.extract_strided_slice %87 {offsets = [1, 0], sizes = [1, 128], strides = [1, 1]} : vector<2x128xf32> to vector<1x128xf32>
    %90 = arith.mulf %88, %88 : vector<1x128xf32>
    %91 = arith.subf %89, %90 : vector<1x128xf32>
    %cst_84 = arith.constant 9.99999974E-6 : f32
    %92 = vector.broadcast %cst_84 : f32 to vector<1x128xf32>
    %93 = arith.addf %91, %92 : vector<1x128xf32>
    %94 = math.rsqrt %93 : vector<1x128xf32>
    %95 = arith.mulf %77, %94 : vector<1x128xf32>
    %96 = arith.mulf %88, %95 : vector<1x128xf32>
    %97 = arith.subf %78, %96 : vector<1x128xf32>
    %98 = vector.broadcast %95 : vector<1x128xf32> to vector<32x128xf32>
    %99 = arith.mulf %75, %98 : vector<32x128xf32>
    %100 = vector.broadcast %97 : vector<1x128xf32> to vector<32x128xf32>
    %101 = arith.addf %99, %100 : vector<32x128xf32>
    %102 = arith.addf %101, %52 : vector<32x128xf32>
    %cst_85 = arith.constant 0.000000e+00 : f32
    %103 = vector.broadcast %cst_85 : f32 to vector<32x128xf32>
    %104 = arith.maximumf %102, %103 : vector<32x128xf32>
    %c0_86 = arith.constant 0 : index
    %c0_87 = arith.constant 0 : index
    %105 = vector.load %arg9[%c0_86, %c0_87] : memref<32x128xf32, #tpu.memory_space<vmem>>, vector<32x128xf32>
    tpu.vector_store %arg9[%c0_86, %c0_87], %104 {strides = array<i32>} : memref<32x128xf32, #tpu.memory_space<vmem>>, vector<32x128xf32>,
    return
  }
}

</mosaic_0001>

<bundles_post_ra>
// kernel: tpu_custom_call.1
= control target key start
LH: loop header
LB: loop body
LE: loop exit
PB: predicated region body
PF: predicated region fallthrough
CT: control target
= control target key end

     0   :  { %14 = vsyncpa [#allocation5], 0  ;;  %s1426_s0 = inlined_call_operand.hbm [shape: f32[2,16,64], index: 0, kind: input, shape index: {}]   ;;  %s1427_s1 = inlined_call_operand.hbm [shape: f32[3,64,256], index: 1, kind: input, shape index: {}]   ;;  %s1428_s2 = inlined_call_operand.hbm [shape: f32[3,128,128], index: 2, kind: input, shape index: {}]   ;;  %s1429_s3 = inlined_call_operand.hbm [shape: f32[256,256], index: 3, kind: input, shape index: {}]   ;;  %s1430_s4 = inlined_call_operand.hbm [shape: f32[128,128], index: 4, kind: input, shape index: {}]   ;;  %s1431_s5 = inlined_call_operand.vmem [shape: f32[1,256], index: 5, kind: input, shape index: {}]   ;;  %s1432_s6 = inlined_call_operand.vmem [shape: f32[1,256], index: 6, kind: input, shape index: {}]   ;;  %s1433_s7 = inlined_call_operand.vmem [shape: f32[1,128], index: 7, kind: input, shape index: {}]   ;;  %s1434_s8 = inlined_call_operand.vmem [shape: f32[1,128], index: 8, kind: input, shape index: {}]   ;;  %s1435_s9 = inlined_call_operand.hbm [shape: f32[32,128], index: 9, kind: output, shape index: {}]  }
   0x1   :  { %15 = vsyncpa [#allocation8], 0 }
   0x2   :  { %16 = vsyncpa [#allocation11], 0  ;;  %s35_s11 = sshll.u32 %s1427_s1, 4  ;;  %s36_s11 = int_to_ptr.hbm [resolvable:$true] %s35_s11 }
   0x3   :  { %17 = vsyncpa [#allocation6], 0  ;;  %s1173_s12 = smov [#allocation7]   ;;  %s61_s16 = sshll.u32 %s1429_s3, 4  ;;  %s62_s16 = int_to_ptr.hbm [resolvable:$true] %s61_s16 }
   0x4   :  { %s37_s13 = sshll.u32 %s1173_s12, 4  ;;  %s1174_s17 = smov 256   ;;  %s38_s13 = int_to_ptr.vmem [resolvable:$true] %s37_s13 }
   0x5   :  { %s1175_s18 = smov 16   ;;  %s1176_s19 = smov [#allocation10]  }
   0x6   :  { %43 = dma.hbm_to_vmem [thread:$0]  %s36_s11, 6144, %s38_s13, [#allocation8], %s1174_s17, %s1174_s17, %s1175_s18  }
   0x7   :  { %s63_s20 = sshll.u32 %s1176_s19, 4  ;;  %s22_s23 = sshll.u32 %s1426_s0, 4  ;;  %s64_s20 = int_to_ptr.vmem [resolvable:$true] %s63_s20  ;;  %s23_s23 = int_to_ptr.hbm [resolvable:$true] %s22_s23 }
   0x8   :  { %69 = dma.hbm_to_vmem [thread:$0]  %s62_s16, 8192, %s64_s20, [#allocation11], %s1174_s17, %s1174_s17, %s1175_s18  }
   0x9   :  { %s1177_s1 = smov [#allocation4]   ;;  %s48_s3 = sshll.u32 %s1428_s2, 4  ;;  %s49_s3 = int_to_ptr.hbm [resolvable:$true] %s48_s3 }
   0xa   :  { %s24_s24 = sshll.u32 %s1177_s1, 4  ;;  %s1178_s27 = smov 128   ;;  %s25_s24 = int_to_ptr.vmem [resolvable:$true] %s24_s24 }
   0xb   :  { %s1179_s28 = smov 8   ;;  %s1180_s29 = smov [#allocation9]  }
   0xc   :  { %30 = dma.hbm_to_vmem [thread:$0]  %s23_s23, 512, %s25_s24, [#allocation5], %s1178_s27, %s1178_s27, %s1179_s28  }
   0xd   :  { %s50_s30 = sshll.u32 %s1180_s29, 4  ;;  %s74_s11 = sshll.u32 %s1430_s4, 4  ;;  %s51_s30 = int_to_ptr.vmem [resolvable:$true] %s50_s30  ;;  %s75_s11 = int_to_ptr.hbm [resolvable:$true] %s74_s11 }
   0xe   :  { %56 = dma.hbm_to_vmem [thread:$0]  %s49_s3, 6144, %s51_s30, [#allocation8], %s1178_s27, %s1178_s27, %s1179_s28  }
   0xf   :  { %s1181_s2 = smov [#allocation12]  }
  0x10   :  { %s76_s12 = sshll.u32 %s1181_s2, 4  ;;  %s77_s12 = int_to_ptr.vmem [resolvable:$true] %s76_s12 }
  0x11   :  { %82 = dma.hbm_to_vmem [thread:$0]  %s75_s11, 2048, %s77_s12, [#allocation11], %s1178_s27, %s1178_s27, %s1179_s28  }
  0x12   :  { %1165 = dma.done.wait [#allocation5], 512  }
  0x13   :  { %1166 = vsyncadd [#allocation5], 4294966784 }
  0x14   :  { %1167 = dma.done.wait [#allocation8], 12288  }
  0x15   :  { %1168 = vsyncadd [#allocation8], 4294955008 }
  0x16   :  { %1169 = dma.done.wait [#allocation11], 10240  }
  0x17   :  { %1170 = vsyncadd [#allocation11], 4294957056  ;;  %vm111_vm0 = vcmask 516096   ;;  %v1182_v0 = vmov 0.0   ;;  %v164_v1 = vld [vmem:[#allocation7 + $0xf0] sm:$0xff]  ;;  %v165_v2 = vld [vmem:[#allocation7 + $0xf8] sm:$0xff] }
  0x18   :  { %112 = vst.msk [vmem:[#allocation2] sm:$0x1] %vm111_vm0, %v1182_v0  ;;  %v144_v3 = vld [vmem:[#allocation7 + $0x78] sm:$0xff]  ;;  %996 = vmatpush.msra.mxu2 %v164_v1  ;;  %215 = vmatpush.msra.mxu1 %v165_v2  ;;  %v162_v4 = vld [vmem:[#allocation7 + $0xe0] sm:$0xff]  ;;  %v163_v5 = vld [vmem:[#allocation7 + $0xe8] sm:$0xff]  ;;  %vm120_vm1 = vcmask 523264  }
  0x19   :  { %113 = vst.msk [vmem:[#allocation2 + $0x18] sm:$0x1] %vm111_vm0, %v1182_v0  ;;  %v142_v6 = vld [vmem:[#allocation7 + $0x68] sm:$0xff]  ;;  %285 = vmatpush.msra.mxu3 %v144_v3  ;;  %v160_v7 = vld [vmem:[#allocation7 + $0xd0] sm:$0xff]  ;;  %v161_v8 = vld [vmem:[#allocation7 + $0xd8] sm:$0xff]  ;;  %186 = vmatpush.msra.mxu0 %v164_v1  ;;  %vm515_vm2 = vcmask 1040384  }
  0x1a   :  { %114 = vst.msk [vmem:[#allocation2 + $0x11] sm:$0x1] %vm111_vm0, %v1182_v0  ;;  %997 = vmatpush.msra.mxu2 %v162_v4  ;;  %216 = vmatpush.msra.mxu1 %v163_v5  ;;  %v140_v9 = vld [vmem:[#allocation7 + $0x58] sm:$0xff]  ;;  %v158_v10 = vld [vmem:[#allocation7 + $0xc0] sm:$0xff]  ;;  %v159_v11 = vld [vmem:[#allocation7 + $0xc8] sm:$0xff]  ;;  %s957_s20 = sshll.u32 %s1435_s9, 4  ;;  %s958_s20 = int_to_ptr.hbm [resolvable:$true] %s957_s20 }
  0x1b   :  { %115 = vst.msk [vmem:[#allocation2 + $0x29] sm:$0x1] %vm111_vm0, %v1182_v0  ;;  %286 = vmatpush.msra.mxu3 %v142_v6  ;;  %187 = vmatpush.msra.mxu0 %v162_v4  ;;  %v138_v12 = vld [vmem:[#allocation7 + $0x48] sm:$0xff]  ;;  %v156_v13 = vld [vmem:[#allocation7 + $0xb0] sm:$0xff]  ;;  %v157_v14 = vld [vmem:[#allocation7 + $0xb8] sm:$0xff] }
  0x1c   :  { %678 = vst [vmem:[#allocation3] sm:$0x1] %v1182_v0  ;;  %998 = vmatpush.msra.mxu2 %v160_v7  ;;  %217 = vmatpush.msra.mxu1 %v161_v8  ;;  %v136_v15 = vld [vmem:[#allocation7 + $0x38] sm:$0xff]  ;;  %v154_v16 = vld [vmem:[#allocation7 + $0xa0] sm:$0xff]  ;;  %v155_v17 = vld [vmem:[#allocation7 + $0xa8] sm:$0xff] }
  0x1d   :  { %679 = vst [vmem:[#allocation3 + $0x18] sm:$0x1] %v1182_v0  ;;  %287 = vmatpush.msra.mxu3 %v140_v9  ;;  %188 = vmatpush.msra.mxu0 %v160_v7  ;;  %v118_v18 = vld [vmem:[#allocation4 + $0x10] sm:$0xff]  ;;  %v116_v19 = vld [vmem:[#allocation4] sm:$0xff]  ;;  %v134_v20 = vld [vmem:[#allocation7 + $0x28] sm:$0xff] }
  0x1e   :  { %680 = vst [vmem:[#allocation3 + $0x11] sm:$0x1] %v1182_v0  ;;  %999 = vmatpush.msra.mxu2 %v158_v10  ;;  %218 = vmatpush.msra.mxu1 %v159_v11  ;;  %v152_v21 = vld [vmem:[#allocation7 + $0x90] sm:$0xff]  ;;  %v153_v22 = vld [vmem:[#allocation7 + $0x98] sm:$0xff]  ;;  %v117_v25 = vld [vmem:[#allocation4 + $0x8] sm:$0xff] }
  0x1f   :  { %681 = vst [vmem:[#allocation3 + $0x29] sm:$0x1] %v1182_v0  ;;  %288 = vmatpush.msra.mxu3 %v138_v12  ;;  %189 = vmatpush.msra.mxu0 %v158_v10  ;;  %v119_v23 = vld [vmem:[#allocation4 + $0x18] sm:$0xff]  ;;  %v150_v26 = vld [vmem:[#allocation7 + $0x80] sm:$0xff]  ;;  %v151_v27 = vld [vmem:[#allocation7 + $0x88] sm:$0xff] }
  0x20   :  { %1000 = vmatpush.msra.mxu2 %v156_v13  ;;  %219 = vmatpush.msra.mxu1 %v157_v14  ;;  %123 = vst.msk [vmem:[#allocation2 + $0x19] sm:$0xff] %vm120_vm1, %v118_v18  ;;  %v132_v24 = vld [vmem:[#allocation7 + $0x18] sm:$0xff]  ;;  %v130_v28 = vld [vmem:[#allocation7 + $0x8] sm:$0xff]  ;;  %v143_v31 = vld [vmem:[#allocation7 + $0x70] sm:$0xff] }
  0x21   :  { %289 = vmatpush.msra.mxu3 %v136_v15  ;;  %121 = vst.msk [vmem:[#allocation2 + $0x1] sm:$0xff] %vm120_vm1, %v116_v19  ;;  %190 = vmatpush.msra.mxu0 %v156_v13  ;;  %v326_v29 = vld [vmem:[#allocation7 + $0x178] sm:$0xff]  ;;  %v324_v32 = vld [vmem:[#allocation7 + $0x168] sm:$0xff]  ;;  %v141_v35 = vld [vmem:[#allocation7 + $0x60] sm:$0xff] }
  0x22   :  { %1001 = vmatpush.msra.mxu2 %v154_v16  ;;  %220 = vmatpush.msra.mxu1 %v155_v17  ;;  %124 = vst.msk [vmem:[#allocation2 + $0x21] sm:$0xff] %vm120_vm1, %v119_v23  ;;  %v322_v36 = vld [vmem:[#allocation7 + $0x158] sm:$0xff]  ;;  %v325_v37 = vld [vmem:[#allocation7 + $0x170] sm:$0xff]  ;;  %v320_v39 = vld [vmem:[#allocation7 + $0x148] sm:$0xff] }
  0x23   :  { %290 = vmatpush.msra.mxu3 %v134_v20  ;;  %191 = vmatpush.msra.mxu0 %v154_v16  ;;  %122 = vst.msk [vmem:[#allocation2 + $0x9] sm:$0xff] %vm120_vm1, %v117_v25  ;;  %v139_v38 = vld [vmem:[#allocation7 + $0x50] sm:$0xff]  ;;  %v323_v40 = vld [vmem:[#allocation7 + $0x160] sm:$0xff]  ;;  %v318_v42 = vld [vmem:[#allocation7 + $0x138] sm:$0xff] }
  0x24   :  { %1002 = vmatpush.msra.mxu2 %v152_v21  ;;  %221 = vmatpush.msra.mxu1 %v153_v22  ;;  %v137_v41 = vld [vmem:[#allocation7 + $0x40] sm:$0xff]  ;;  %v135_v46 = vld [vmem:[#allocation7 + $0x30] sm:$0xff]  ;;  %v316_v48 = vld [vmem:[#allocation7 + $0x128] sm:$0xff] }
  0x25   :  { %291 = vmatpush.msra.mxu3 %v132_v24  ;;  %192 = vmatpush.msra.mxu0 %v152_v21  ;;  %v321_v47 = vld [vmem:[#allocation7 + $0x150] sm:$0xff]  ;;  %v133_v49 = vld [vmem:[#allocation7 + $0x20] sm:$0xff]  ;;  %v314_v51 = vld [vmem:[#allocation7 + $0x118] sm:$0xff] }
  0x26   :  { %1003 = vmatpush.msra.mxu2 %v150_v26  ;;  %222 = vmatpush.msra.mxu1 %v151_v27  ;;  %v319_v50 = vld [vmem:[#allocation7 + $0x140] sm:$0xff]  ;;  %v131_v52 = vld [vmem:[#allocation7 + $0x10] sm:$0xff]  ;;  %v312_v54 = vld [vmem:[#allocation7 + $0x108] sm:$0xff] }
  0x27   :  { %292 = vmatpush.msra.mxu3 %v130_v28  ;;  %v147_v30 = vld [vmem:[#allocation2 + $0x19] sm:$0xff]  ;;  %193 = vmatpush.msra.mxu0 %v150_v26  ;;  %v317_v53 = vld [vmem:[#allocation7 + $0x130] sm:$0xff]  ;;  %v434_v7 = vld [vmem:[#allocation10 + $0xe8] sm:$0xff] }
  0x28   :  { %376 = vmatpush.msrb.mxu1 %v326_v29  ;;  %974 = vmatmul.msk.f32.vlgmr.msra.gmra.mxu2 %vm120_vm1, %v147_v30  ;;  %v145_v33 = vld [vmem:[#allocation2 + $0x1] sm:$0xff]  ;;  %v127_v56 = vld [vmem:[#allocation2 + $0x18] sm:$0xff]  ;;  %v313_v58 = vld [vmem:[#allocation7 + $0x110] sm:$0xff] }
  0x29   :  { %v125_v34 = vld [vmem:[#allocation2] sm:$0xff]  ;;  %976 = vmatmul.msk.f32.vlgmr.msra.gmra.mxu1 %vm120_vm1, %v145_v33  ;;  %256 = vmatpush.msrb.mxu2 %v143_v31  ;;  %v435_v4 = vld [vmem:[#allocation10 + $0xf0] sm:$0xff]  ;;  %v436_v5 = vld [vmem:[#allocation10 + $0xf8] sm:$0xff] }
  0x2a   :  { %984 = vmatmul.msk.f32.vlgmr.msra.gmra.mxu3 %vm120_vm1, %v125_v34  ;;  %377 = vmatpush.msrb.mxu1 %v324_v32  ;;  %v148_v43 = vld [vmem:[#allocation2 + $0x21] sm:$0xff]  ;;  %v146_v44 = vld [vmem:[#allocation2 + $0x9] sm:$0xff]  ;;  %v432_v10 = vld [vmem:[#allocation10 + $0xd8] sm:$0xff] }
  0x2b   :  { %972 = vmatmul.msk.f32.vlgmr.msra.gmra.mxu0 %vm120_vm1, %v145_v33  ;;  %257 = vmatpush.msrb.mxu2 %v141_v35  ;;  %v126_v45 = vld [vmem:[#allocation2 + $0x8] sm:$0xff]  ;;  %v129_v55 = vld [vmem:[#allocation7] sm:$0xff]  ;;  %v431_v9 = vld [vmem:[#allocation10 + $0xd0] sm:$0xff] }
  0x2c   :  { %378 = vmatpush.msrb.mxu1 %v322_v36  ;;  %347 = vmatpush.msrb.mxu0 %v325_v37  ;;  %v315_v57 = vld [vmem:[#allocation7 + $0x120] sm:$0xff]  ;;  %v307_v62 = vld [vmem:[#allocation2 + $0xa] sm:$0xff]  ;;  %v428_v16 = vld [vmem:[#allocation10 + $0xb8] sm:$0xff] }
  0x2d   :  { %258 = vmatpush.msrb.mxu2 %v139_v38  ;;  %v311_v59 = vld [vmem:[#allocation7 + $0x100] sm:$0xff]  ;;  %v430_v12 = vld [vmem:[#allocation10 + $0xc8] sm:$0xff]  ;;  %v467_v14 = vld [vmem:[#allocation10 + $0x1f0] sm:$0xff] }
  0x2e   :  { %379 = vmatpush.msrb.mxu1 %v320_v39  ;;  %348 = vmatpush.msrb.mxu0 %v323_v40  ;;  %v306_v60 = vld [vmem:[#allocation2 + $0x2] sm:$0xff]  ;;  %v308_v63 = vld [vmem:[#allocation2 + $0x1a] sm:$0xff]  ;;  %v427_v15 = vld [vmem:[#allocation10 + $0xb0] sm:$0xff] }
  0x2f   :  { %259 = vmatpush.msrb.mxu2 %v137_v41  ;;  %v128_v61 = vld [vmem:[#allocation2 + $0x20] sm:$0xff]  ;;  %538 = vmatpush.msrb.mxu3 %v467_v14  ;;  %v468_v18 = vld [vmem:[#allocation10 + $0x1f8] sm:$0xff]  ;;  %v426_v21 = vld [vmem:[#allocation10 + $0xa8] sm:$0xff] }
  0x30   :  { %380 = vmatpush.msrb.mxu1 %v318_v42  ;;  %975 = vmatmul.msk.f32.gmra.mxu2 %vm120_vm1, %v148_v43  ;;  %v309_v0 = vld [vmem:[#allocation2 + $0x22] sm:$0xff]  ;;  %v463_v24 = vld [vmem:[#allocation10 + $0x1d0] sm:$0xff]  ;;  %v424_v26 = vld [vmem:[#allocation10 + $0x98] sm:$0xff] }
  0x31   :  { %977 = vmatmul.msk.f32.gmra.mxu1 %vm120_vm1, %v146_v44  ;;  %260 = vmatpush.msrb.mxu2 %v135_v46  ;;  %v433_v6 = vld [vmem:[#allocation10 + $0xe0] sm:$0xff]  ;;  %v466_v23 = vld [vmem:[#allocation10 + $0x1e8] sm:$0xff]  ;;  %v423_v25 = vld [vmem:[#allocation10 + $0x90] sm:$0xff] }
  0x32   :  { %985 = vmatmul.msk.f32.gmra.mxu3 %vm120_vm1, %v126_v45  ;;  %349 = vmatpush.msrb.mxu0 %v321_v47  ;;  %v429_v11 = vld [vmem:[#allocation10 + $0xc0] sm:$0xff]  ;;  %v464_v27 = vld [vmem:[#allocation10 + $0x1d8] sm:$0xff]  ;;  %v462_v31 = vld [vmem:[#allocation10 + $0x1c8] sm:$0xff] }
  0x33   :  { %381 = vmatpush.msrb.mxu1 %v316_v48  ;;  %261 = vmatpush.msrb.mxu2 %v133_v49  ;;  %v465_v19 = vld [vmem:[#allocation10 + $0x1e0] sm:$0xff]  ;;  %v459_v33 = vld [vmem:[#allocation10 + $0x1b0] sm:$0xff]  ;;  %v420_v35 = vld [vmem:[#allocation10 + $0x78] sm:$0xff] }
  0x34   :  { %973 = vmatmul.msk.f32.gmra.mxu0 %vm120_vm1, %v146_v44  ;;  %v425_v20 = vld [vmem:[#allocation10 + $0xa0] sm:$0xff]  ;;  %539 = vmatpush.msrb.mxu3 %v465_v19  ;;  %v460_v38 = vld [vmem:[#allocation10 + $0x1b8] sm:$0xff]  ;;  %v418_v41 = vld [vmem:[#allocation10 + $0x68] sm:$0xff] }
  0x35   :  { %350 = vmatpush.msrb.mxu0 %v319_v50  ;;  %382 = vmatpush.msrb.mxu1 %v314_v51  ;;  %v461_v28 = vld [vmem:[#allocation10 + $0x1c0] sm:$0xff]  ;;  %v455_v44 = vld [vmem:[#allocation10 + $0x190] sm:$0xff]  ;;  %v416_v46 = vld [vmem:[#allocation10 + $0x58] sm:$0xff] }
  0x36   :  { %262 = vmatpush.msrb.mxu2 %v131_v52  ;;  %540 = vmatpush.msrb.mxu3 %v463_v24  ;;  %v421_v29 = vld [vmem:[#allocation10 + $0x80] sm:$0xff]  ;;  %v456_v47 = vld [vmem:[#allocation10 + $0x198] sm:$0xff]  ;;  %v414_v50 = vld [vmem:[#allocation10 + $0x48] sm:$0xff] }
  0x37   :  { %351 = vmatpush.msrb.mxu0 %v317_v53  ;;  %383 = vmatpush.msrb.mxu1 %v312_v54  ;;  %v457_v39 = vld [vmem:[#allocation10 + $0x1a0] sm:$0xff]  ;;  %v454_v51 = vld [vmem:[#allocation10 + $0x188] sm:$0xff]  ;;  %v451_v52 = vld [vmem:[#allocation10 + $0x170] sm:$0xff] }
  0x38   :  { %263 = vmatpush.msrb.mxu2 %v129_v55  ;;  %541 = vmatpush.msrb.mxu3 %v461_v28  ;;  %v417_v40 = vld [vmem:[#allocation10 + $0x60] sm:$0xff]  ;;  %v411_v53 = vld [vmem:[#allocation10 + $0x30] sm:$0xff]  ;;  %v412_v54 = vld [vmem:[#allocation10 + $0x38] sm:$0xff] }
  0x39   :  { %978 = vmatmul.msk.f32.gmra.mxu1 %vm120_vm1, %v147_v30  ;;  %980 = vmatmul.msk.f32.vlgmr.msrb.gmra.mxu2 %vm120_vm1, %v125_v34  ;;  %v422_v30 = vld [vmem:[#allocation10 + $0x88] sm:$0xff]  ;;  %v419_v34 = vld [vmem:[#allocation10 + $0x70] sm:$0xff]  ;;  %v453_v48 = vld [vmem:[#allocation10 + $0x180] sm:$0xff] }
  0x3a   :  { %986 = vmatmul.msk.f32.gmra.mxu3 %vm120_vm1, %v127_v56  ;;  %352 = vmatpush.msrb.mxu0 %v315_v57  ;;  %v413_v49 = vld [vmem:[#allocation10 + $0x40] sm:$0xff]  ;;  %v452_v57 = vld [vmem:[#allocation10 + $0x178] sm:$0xff]  ;;  %v439_v24 = vld [vmem:[#allocation10 + $0x110] sm:$0xff] }
  0x3b   :  { %518 = vmatpush.msra.mxu2 %v435_v4  ;;  %578 = vmatpush.msra.mxu1 %v468_v18  ;;  %v407_v4 = vld [vmem:[#allocation10 + $0x10] sm:$0xff]  ;;  %v444_v14 = vld [vmem:[#allocation10 + $0x138] sm:$0xff] }
  0x3c   :  { %353 = vmatpush.msrb.mxu0 %v313_v58  ;;  %542 = vmatpush.msrb.mxu3 %v459_v33  ;;  %v449_v58 = vld [vmem:[#allocation10 + $0x160] sm:$0xff] }
  0x3d   :  { %519 = vmatpush.msra.mxu2 %v433_v6  ;;  %579 = vmatpush.msra.mxu1 %v466_v23  ;;  %v448_v6 = vld [vmem:[#allocation10 + $0x158] sm:$0xff] }
  0x3e   :  { %354 = vmatpush.msrb.mxu0 %v311_v59  ;;  %543 = vmatpush.msrb.mxu3 %v457_v39  ;;  %v409_v59 = vld [vmem:[#allocation10 + $0x20] sm:$0xff] }
  0x3f   :  { %988 = vmatmul.msk.f32.vlgmr.msrb.gmra.mxu0 %vm120_vm1, %v306_v60  ;;  %520 = vmatpush.msra.mxu2 %v431_v9  ;;  %v405_v9 = vld [vmem:[#allocation10] sm:$0xff] }
  0x40   :  { %558 = vmatpush.msra.mxu0 %v436_v5  ;;  %580 = vmatpush.msra.mxu1 %v464_v27  ;;  %v408_v5 = vld [vmem:[#allocation10 + $0x18] sm:$0xff] }
  0x41   :  { %979 = vmatmul.msk.f32.gmra.mxu1 %vm120_vm1, %v148_v43  ;;  %981 = vmatmul.msk.f32.gmra.mxu2 %vm120_vm1, %v126_v45  ;;  %v458_v43 = vld [vmem:[#allocation10 + $0x1a8] sm:$0xff]  ;;  %v415_v45 = vld [vmem:[#allocation10 + $0x50] sm:$0xff] }
  0x42   :  { %987 = vmatmul.msk.f32.gmra.mxu3 %vm120_vm1, %v128_v61  ;;  %559 = vmatpush.msra.mxu0 %v434_v7  ;;  %v445_v7 = vld [vmem:[#allocation10 + $0x140] sm:$0xff] }
  0x43   :  { %521 = vmatpush.msra.mxu2 %v429_v11  ;;  %581 = vmatpush.msra.mxu1 %v462_v31  ;;  %v446_v11 = vld [vmem:[#allocation10 + $0x148] sm:$0xff] }
  0x44   :  { %560 = vmatpush.msra.mxu0 %v432_v10  ;;  %544 = vmatpush.msrb.mxu3 %v455_v44  ;;  %v406_v10 = vld [vmem:[#allocation10 + $0x8] sm:$0xff] }
  0x45   :  { %522 = vmatpush.msra.mxu2 %v427_v15  ;;  %582 = vmatpush.msra.mxu1 %v460_v38 }
  0x46   :  { %561 = vmatpush.msra.mxu0 %v430_v12  ;;  %545 = vmatpush.msrb.mxu3 %v453_v48  ;;  %v443_v12 = vld [vmem:[#allocation10 + $0x130] sm:$0xff] }
  0x47   :  { %989 = vmatmul.msk.f32.gmra.mxu0 %vm120_vm1, %v307_v62  ;;  %523 = vmatpush.msra.mxu2 %v425_v20  ;;  %v442_v20 = vld [vmem:[#allocation10 + $0x128] sm:$0xff] }
  0x48   :  { %562 = vmatpush.msra.mxu0 %v428_v16  ;;  %583 = vmatpush.msra.mxu1 %v458_v43  ;;  %v441_v16 = vld [vmem:[#allocation10 + $0x120] sm:$0xff] }
  0x49   :  { %982 = vmatmul.msk.f32.gmra.mxu2 %vm120_vm1, %v127_v56  ;;  %992 = vmatmul.msk.f32.vlgmr.msrb.gmra.mxu1 %vm120_vm1, %v306_v60  ;;  %v410_v60 = vld [vmem:[#allocation10 + $0x28] sm:$0xff] }
  0x4a   :  { %563 = vmatpush.msra.mxu0 %v426_v21  ;;  %524 = vmatpush.msra.mxu2 %v423_v25 }
  0x4b   :  { %584 = vmatpush.msra.mxu1 %v456_v47  ;;  %546 = vmatpush.msrb.mxu3 %v451_v52 }
  0x4c   :  { %564 = vmatpush.msra.mxu0 %v424_v26  ;;  %525 = vmatpush.msra.mxu2 %v421_v29  ;;  %v440_v26 = vld [vmem:[#allocation10 + $0x118] sm:$0xff]  ;;  %v438_v29 = vld [vmem:[#allocation10 + $0x108] sm:$0xff] }
  0x4d   :  { %585 = vmatpush.msra.mxu1 %v454_v51  ;;  %547 = vmatpush.msrb.mxu3 %v449_v58 }
  0x4e   :  { %565 = vmatpush.msra.mxu0 %v422_v30  ;;  %526 = vmatpush.msra.mxu2 %v419_v34 }
  0x4f   :  { %990 = vmatmul.msk.f32.gmra.mxu0 %vm120_vm1, %v308_v63  ;;  %586 = vmatpush.msra.mxu1 %v452_v57 }
  0x50   :  { %566 = vmatpush.msra.mxu0 %v420_v35  ;;  %527 = vmatpush.msra.mxu2 %v417_v40 }
  0x51   :  { %983 = vmatmul.msk.f32.gmra.mxu2 %vm120_vm1, %v128_v61  ;;  %993 = vmatmul.msk.f32.gmra.mxu1 %vm120_vm1, %v307_v62 }
  0x52   :  { %567 = vmatpush.msra.mxu0 %v418_v41  ;;  %528 = vmatpush.msra.mxu2 %v415_v45 }
  0x54   :  { %568 = vmatpush.msra.mxu0 %v416_v46  ;;  %529 = vmatpush.msra.mxu2 %v413_v49 }
  0x56   :  { %569 = vmatpush.msra.mxu0 %v414_v50  ;;  %530 = vmatpush.msra.mxu2 %v411_v53 }
  0x57   :  { %991 = vmatmul.msk.f32.gmra.mxu0 %vm120_vm1, %v309_v0 }
  0x58   :  { %570 = vmatpush.msra.mxu0 %v412_v54  ;;  %531 = vmatpush.msra.mxu2 %v409_v59 }
  0x59   :  { %994 = vmatmul.msk.f32.gmra.mxu1 %vm120_vm1, %v308_v63  ;;  %v450_v63 = vld [vmem:[#allocation10 + $0x168] sm:$0xff] }
  0x5a   :  { %571 = vmatpush.msra.mxu0 %v410_v60  ;;  %587 = vmatpush.msra.mxu1 %v450_v63 }
  0x5b   :  { %532 = vmatpush.msra.mxu2 %v407_v4 }
  0x5c   :  { %572 = vmatpush.msra.mxu0 %v408_v5  ;;  %588 = vmatpush.msra.mxu1 %v448_v6 }
  0x5d   :  { %533 = vmatpush.msra.mxu2 %v405_v9 }
  0x5e   :  { %573 = vmatpush.msra.mxu0 %v406_v10  ;;  %589 = vmatpush.msra.mxu1 %v446_v11 }
  0x60   :  { %590 = vmatpush.msra.mxu1 %v444_v14 }
  0x61   :  { %995 = vmatmul.msk.f32.gmra.mxu1 %vm120_vm1, %v309_v0  ;;  %v447_v0 = vld [vmem:[#allocation10 + $0x150] sm:$0xff] }
  0x62   :  { %548 = vmatpush.msrb.mxu3 %v447_v0  ;;  %591 = vmatpush.msra.mxu1 %v442_v20 }
  0x64   :  { %549 = vmatpush.msrb.mxu3 %v445_v7  ;;  %592 = vmatpush.msra.mxu1 %v440_v26 }
  0x66   :  { %550 = vmatpush.msrb.mxu3 %v443_v12  ;;  %593 = vmatpush.msra.mxu1 %v438_v29 }
  0x68   :  { %551 = vmatpush.msrb.mxu3 %v441_v16 }
  0x6a   :  { %552 = vmatpush.msrb.mxu3 %v439_v24 }
  0xa6   :  { %v1286_v1 = vpop.f32.mrf.mxu1 }
  0xa8   :  { %v1288_v2 = vpop.f32.mrf.mxu0 }
  0xab   :  { %v1290_v3 = vpop.f32.mrf.mxu2 }
  0xad   :  { %v1300_v32 = vpop.f32.mrf.mxu3 }
  0xae   :  { %v1292_v8 = vpop.f32.mrf.mxu1  ;;  %v295_v39 = vadd.f32 %v1300_v32, %v1286_v1 }
  0xb1   :  { %v1294_v13 = vpop.f32.mrf.mxu0 }
  0xb3   :  { %v1296_v17 = vpop.f32.mrf.mxu2 }
  0xb5   :  { %v297_v61 = vpop.f32.mrf.mxu3 }
  0xb6   :  { %v1298_v22 = vpop.f32.mrf.mxu1 }
  0xbc   :  { %v1302_v36 = vpop.f32.mrf.mxu2  ;;  %v1304_v37 = vpop.f32.mrf.mxu0 }
  0xbd   :  { %v266_v21 = vadd.f32 %v1302_v36, %v1288_v2  ;;  %v300_v28 = vpop.f32.mrf.mxu3 }
  0xbe   :  { %v1306_v42 = vpop.f32.mrf.mxu1  ;;  %v301_v40 = vadd.f32 %v300_v28, %v1298_v22 }
  0xbf   :  { %v1317_v30 = vadd.f32 %v1304_v37, %v266_v21 }
  0xc1   :  { %v489_v35 = vmul.f32 %v1317_v30, %v1317_v30 }
  0xc4   :  { %v268_v55 = vpop.f32.mrf.mxu2  ;;  %v359_v56 = vpop.f32.mrf.mxu0 }
  0xc5   :  { %v269_v15 = vadd.f32 %v268_v55, %v1294_v13  ;;  %v437_v13 = vld [vmem:[#allocation10 + $0x100] sm:$0xff]  ;;  %v303_v22 = vpop.f32.mrf.mxu3 }
  0xc6   :  { %v1308_v62 = vpop.f32.mrf.mxu1  ;;  %553 = vmatpush.msrb.mxu3 %v437_v13  ;;  %v304_v53 = vadd.f32 %v303_v22, %v1306_v42  ;;  %v805_v22 = vld [vmem:[#allocation9 + $0x178] sm:$0xff] }
  0xc7   :  { %v1314_v27 = vadd.f32 %v359_v56, %v269_v15  ;;  %v1340_v46 = vadd.f32 %v1308_v62, %v295_v39  ;;  %806 = vmatpush.msrb.mxu0 %v805_v22  ;;  %v692_v22 = vld [vmem:[#allocation9 + $0x10] sm:$0xff] }
  0xc9   :  { %v491_v2 = vmul.f32 %v1314_v27, %v1314_v27  ;;  %v471_v36 = vadd.f32 %v1314_v27, %v1317_v30  ;;  %v490_v51 = vmul.f32 %v1340_v46, %v1340_v46 }
  0xcb   :  { %v497_v43 = vadd.f32 %v491_v2, %v489_v35 }
  0xcc   :  { %v271_v18 = vpop.f32.mrf.mxu2  ;;  %v362_v19 = vpop.f32.mrf.mxu0 }
  0xcd   :  { %v272_v23 = vadd.f32 %v271_v18, %v1290_v3  ;;  %v298_v3 = vadd.f32 %v297_v61, %v1292_v8 }
  0xce   :  { %v388_v25 = vpop.f32.mrf.mxu1 }
  0xcf   :  { %v1319_v31 = vadd.f32 %v362_v19, %v272_v23  ;;  %v1334_v41 = vadd.f32 %v388_v25, %v298_v3 }
  0xd1   :  { %v493_v37 = vmul.f32 %v1319_v31, %v1319_v31  ;;  %v472_v44 = vadd.f32 %v471_v36, %v1319_v31  ;;  %v492_v32 = vmul.f32 %v1334_v41, %v1334_v41  ;;  %v480_v54 = vadd.f32 %v1334_v41, %v1340_v46  ;;  %v725_v36 = vld [vmem:[#allocation9 + $0xf0] sm:$0xff] }
  0xd3   :  { %v498_v48 = vadd.f32 %v497_v43, %v493_v37  ;;  %v506_v57 = vadd.f32 %v492_v32, %v490_v51  ;;  %v722_v32 = vld [vmem:[#allocation9 + $0xd8] sm:$0xff]  ;;  %v704_v51 = vld [vmem:[#allocation9 + $0x70] sm:$0xff] }
  0xd4   :  { %v274_v33 = vpop.f32.mrf.mxu2  ;;  %v365_v34 = vpop.f32.mrf.mxu0 }
  0xd5   :  { %v275_v38 = vadd.f32 %v274_v33, %v1296_v17 }
  0xd6   :  { %v391_v8 = vpop.f32.mrf.mxu1 }
  0xd7   :  { %v1337_v45 = vadd.f32 %v365_v34, %v275_v38  ;;  %v1342_v47 = vadd.f32 %v391_v8, %v301_v40  ;;  %v726_v34 = vld [vmem:[#allocation9 + $0xf8] sm:$0xff]  ;;  %v724_v38 = vld [vmem:[#allocation9 + $0xe8] sm:$0xff] }
  0xd8   :  { %727 = vmatpush.msrb.mxu2 %v726_v34  ;;  %v695_v34 = vld [vmem:[#allocation9 + $0x28] sm:$0xff] }
  0xd9   :  { %v473_v17 = vadd.f32 %v472_v44, %v1337_v45  ;;  %v495_v1 = vmul.f32 %v1337_v45, %v1337_v45  ;;  %v494_v52 = vmul.f32 %v1342_v47, %v1342_v47  ;;  %v481_v61 = vadd.f32 %v480_v54, %v1342_v47  ;;  %v723_v44 = vld [vmem:[#allocation9 + $0xe0] sm:$0xff] }
  0xda   :  { %728 = vmatpush.msrb.mxu2 %v725_v36  ;;  %v795_v36 = vld [vmem:[#allocation9 + $0x128] sm:$0xff] }
  0xdb   :  { %v474_v49 = vrot.slane %v473_v17, 4  ;;  %v499_v50 = vadd.f32 %v498_v48, %v495_v1  ;;  %v507_v63 = vadd.f32 %v506_v57, %v494_v52  ;;  %v705_v1 = vld [vmem:[#allocation9 + $0x78] sm:$0xff]  ;;  %v804_v52 = vld [vmem:[#allocation9 + $0x170] sm:$0xff]  ;;  %v720_v57 = vld [vmem:[#allocation9 + $0xc8] sm:$0xff] }
  0xdc   :  { %729 = vmatpush.msrb.mxu2 %v724_v38  ;;  %756 = vmatpush.msra.mxu3 %v705_v1  ;;  %v793_v1 = vld [vmem:[#allocation9 + $0x118] sm:$0xff] }
  0xdd   :  { %v475_v55 = vadd.f32 %v474_v49, %v473_v17  ;;  %v500_v56 = vrot.slane %v499_v50, 4  ;;  %807 = vmatpush.msrb.mxu0 %v804_v52 }
  0xde   :  { %v394_v58 = vpop.f32.mrf.mxu1  ;;  %730 = vmatpush.msrb.mxu2 %v723_v44  ;;  %757 = vmatpush.msra.mxu3 %v704_v51  ;;  %v791_v51 = vld [vmem:[#allocation9 + $0x108] sm:$0xff] }
  0xdf   :  { %v476_v59 = vrot.slane %v475_v55, 2  ;;  %v501_v60 = vadd.f32 %v500_v56, %v499_v50  ;;  %v1357_v62 = vadd.f32 %v394_v58, %v304_v53  ;;  %v721_v53 = vld [vmem:[#allocation9 + $0xd0] sm:$0xff]  ;;  %v803_v56 = vld [vmem:[#allocation9 + $0x168] sm:$0xff] }
  0xe0   :  { %731 = vmatpush.msrb.mxu2 %v722_v32  ;;  %808 = vmatpush.msrb.mxu0 %v803_v56 }
  0xe1   :  { %v477_v0 = vadd.f32 %v476_v59, %v475_v55  ;;  %v502_v4 = vrot.slane %v501_v60, 2  ;;  %v482_v5 = vadd.f32 %v481_v61, %v1357_v62  ;;  %v496_v42 = vmul.f32 %v1357_v62, %v1357_v62  ;;  %v703_v55 = vld [vmem:[#allocation9 + $0x68] sm:$0xff]  ;;  %v702_v59 = vld [vmem:[#allocation9 + $0x60] sm:$0xff] }
  0xe2   :  { %732 = vmatpush.msrb.mxu2 %v721_v53  ;;  %758 = vmatpush.msra.mxu3 %v703_v55  ;;  %v719_v61 = vld [vmem:[#allocation9 + $0xc0] sm:$0xff]  ;;  %v469_v55 = vld [vmem:[%s1431_s5] sm:$0x3] }
  0xe3   :  { %v483_v6 = vrot.slane %v482_v5, 4  ;;  %v508_v7 = vadd.f32 %v507_v63, %v496_v42  ;;  %v478_v9 = vrot.slane %v477_v0, 1  ;;  %v503_v10 = vadd.f32 %v502_v4, %v501_v60  ;;  %v802_v60 = vld [vmem:[#allocation9 + $0x160] sm:$0xff]  ;;  %v801_v4 = vld [vmem:[#allocation9 + $0x158] sm:$0xff] }
  0xe4   :  { %733 = vmatpush.msrb.mxu2 %v720_v57  ;;  %759 = vmatpush.msra.mxu3 %v702_v59  ;;  %v690_v53 = vld [vmem:[#allocation9] sm:$0xff] }
  0xe5   :  { %v484_v11 = vadd.f32 %v483_v6, %v482_v5  ;;  %v509_v12 = vrot.slane %v508_v7, 4  ;;  %v504_v14 = vrot.slane %v503_v10, 1  ;;  %v479_v18 = vadd.f32 %v478_v9, %v477_v0  ;;  %809 = vmatpush.msrb.mxu0 %v802_v60  ;;  %v701_v0 = vld [vmem:[#allocation9 + $0x58] sm:$0xff]  ;;  %v700_v6 = vld [vmem:[#allocation9 + $0x50] sm:$0xff] }
  0xe6   :  { %734 = vmatpush.msrb.mxu2 %v719_v61  ;;  %v718_v5 = vld [vmem:[#allocation9 + $0xb8] sm:$0xff]  ;;  %760 = vmatpush.msra.mxu3 %v701_v0  ;;  %v717_v9 = vld [vmem:[#allocation9 + $0xb0] sm:$0xff] }
  0xe7   :  { %v485_v15 = vrot.slane %v484_v11, 2  ;;  %v510_v16 = vadd.f32 %v509_v12, %v508_v7  ;;  %v505_v19 = vadd.f32 %v504_v14, %v503_v10  ;;  %810 = vmatpush.msrb.mxu0 %v801_v4  ;;  %v800_v7 = vld [vmem:[#allocation9 + $0x150] sm:$0xff]  ;;  %v799_v12 = vld [vmem:[#allocation9 + $0x148] sm:$0xff]  ;;  %v470_v61 = vld [vmem:[%s1432_s6] sm:$0x3] }
  0xe8   :  { %735 = vmatpush.msrb.mxu2 %v718_v5  ;;  %761 = vmatpush.msra.mxu3 %v700_v6 }
  0xe9   :  { %v516_v20 = vsel %vm515_vm2, %v479_v18, %v505_v19  ;;  %v486_v21 = vadd.f32 %v485_v15, %v484_v11  ;;  %v511_v23 = vrot.slane %v510_v16, 2  ;;  %811 = vmatpush.msrb.mxu0 %v800_v7  ;;  %v699_v11 = vld [vmem:[#allocation9 + $0x48] sm:$0xff]  ;;  %v798_v18 = vld [vmem:[#allocation9 + $0x140] sm:$0xff] }
  0xea   :  { %534 = vmatmul.f32.vlgmr.msra.gmra.mxu2 %v516_v20  ;;  %574 = vmatmul.f32.vlgmr.msra.gmra.mxu0 %v516_v20  ;;  %v716_v15 = vld [vmem:[#allocation9 + $0xa8] sm:$0xff]  ;;  %v715_v19 = vld [vmem:[#allocation9 + $0xa0] sm:$0xff] }
  0xeb   :  { %v487_v24 = vrot.slane %v486_v21, 1  ;;  %v512_v25 = vadd.f32 %v511_v23, %v510_v16  ;;  %736 = vmatpush.msrb.mxu2 %v717_v9  ;;  %762 = vmatpush.msra.mxu3 %v699_v11  ;;  %v698_v16 = vld [vmem:[#allocation9 + $0x40] sm:$0xff]  ;;  %v697_v23 = vld [vmem:[#allocation9 + $0x38] sm:$0xff] }
  0xec   :  { %812 = vmatpush.msrb.mxu0 %v799_v12 }
  0xed   :  { %v513_v26 = vrot.slane %v512_v25, 1  ;;  %v488_v13 = vadd.f32 %v487_v24, %v486_v21  ;;  %737 = vmatpush.msrb.mxu2 %v716_v15  ;;  %763 = vmatpush.msra.mxu3 %v698_v16  ;;  %v797_v24 = vld [vmem:[#allocation9 + $0x138] sm:$0xff] }
  0xee   :  { %813 = vmatpush.msrb.mxu0 %v798_v18 }
  0xef   :  { %v514_v28 = vadd.f32 %v513_v26, %v512_v25  ;;  %738 = vmatpush.msrb.mxu2 %v715_v19  ;;  %v714_v25 = vld [vmem:[#allocation9 + $0x98] sm:$0xff]  ;;  %764 = vmatpush.msra.mxu3 %v697_v23 }
  0xf0   :  { %814 = vmatpush.msrb.mxu0 %v797_v24 }
  0xf1   :  { %v517_v29 = vsel %vm515_vm2, %v488_v13, %v514_v28  ;;  %v696_v28 = vld [vmem:[#allocation9 + $0x30] sm:$0xff]  ;;  %739 = vmatpush.msrb.mxu2 %v714_v25 }
  0xf2   :  { %554 = vmatmul.f32.vlgmr.msrb.gmra.mxu3 %v517_v29  ;;  %594 = vmatmul.f32.vlgmr.msra.gmra.mxu1 %v517_v29  ;;  %v796_v29 = vld [vmem:[#allocation9 + $0x130] sm:$0xff] }
  0xf3   :  { %765 = vmatpush.msra.mxu3 %v696_v28  ;;  %815 = vmatpush.msrb.mxu0 %v796_v29  ;;  %v854_v29 = vld [vmem:[#allocation12 + $0x78] sm:$0xff] }
  0xf4   :  { %880 = vmatpush.msrb.mxu1 %v854_v29 }
  0xf5   :  { %766 = vmatpush.msra.mxu3 %v695_v34  ;;  %816 = vmatpush.msrb.mxu0 %v795_v36  ;;  %v850_v34 = vld [vmem:[#allocation12 + $0x58] sm:$0xff] }
 0x167   :  { %v575_v2 = vpop.f32.mrf.mxu0 }
 0x16d   :  { %v535_v39 = vpop.f32.mrf.mxu2 }
 0x16f   :  { %v595_v3 = vpop.f32.mrf.mxu1 }
 0x170   :  { %v596_v33 = vadd.f32 %v595_v3, %v575_v2 }
 0x172   :  { %v1364_v35 = vmul.f32 0.001953125, %v596_v33  ;;  %v713_v33 = vld [vmem:[#allocation9 + $0x90] sm:$0xff] }
 0x173   :  { %740 = vmatpush.msrb.mxu2 %v713_v33  ;;  %v851_v33 = vld [vmem:[#allocation12 + $0x60] sm:$0xff] }
 0x174   :  { %v601_v37 = vmul.f32 %v1364_v35, %v1364_v35 }
 0x175   :  { %v555_v40 = vpop.f32.mrf.mxu3 }
 0x176   :  { %v605_v8 = vrot.slane %v601_v37, 7  ;;  %v556_v43 = vadd.f32 %v555_v40, %v535_v39  ;;  %v712_v37 = vld [vmem:[#allocation9 + $0x88] sm:$0xff]  ;;  %v694_v40 = vld [vmem:[#allocation9 + $0x20] sm:$0xff] }
 0x177   :  { %741 = vmatpush.msrb.mxu2 %v712_v37  ;;  %767 = vmatpush.msra.mxu3 %v694_v40  ;;  %v849_v37 = vld [vmem:[#allocation12 + $0x50] sm:$0xff]  ;;  %v847_v40 = vld [vmem:[#allocation12 + $0x40] sm:$0xff] }
 0x178   :  { %v609_v48 = vsub.f32 %v1364_v35, %v605_v8  ;;  %v1369_v17 = vmul.f32 0.001953125, %v556_v43  ;;  %v794_v8 = vld [vmem:[#allocation9 + $0x120] sm:$0xff] }
 0x179   :  { %v711_v43 = vld [vmem:[#allocation9 + $0x80] sm:$0xff]  ;;  %817 = vmatpush.msrb.mxu0 %v794_v8 }
 0x17a   :  { %v1371_v49 = vadd.f32 1e-05, %v609_v48  ;;  %v600_v50 = vmul.f32 %v1369_v17, %v1369_v17  ;;  %v693_v48 = vld [vmem:[#allocation9 + $0x18] sm:$0xff]  ;;  %742 = vmatpush.msrb.mxu2 %v711_v43 }
 0x17b   :  { %768 = vmatpush.msra.mxu3 %v693_v48  ;;  %818 = vmatpush.msrb.mxu0 %v793_v1  ;;  %v846_v43 = vld [vmem:[#allocation12 + $0x38] sm:$0xff]  ;;  %v844_v48 = vld [vmem:[#allocation12 + $0x28] sm:$0xff] }
 0x17c   :  { %1015 = vrsqrt.f32 %v1371_v49  ;;  %v604_v54 = vrot.slane %v600_v50, 7  ;;  %vm628_vm4 = vweird.f32 %v1371_v49  ;;  %v691_v50 = vld [vmem:[#allocation9 + $0x8] sm:$0xff] }
 0x17d   :  { %769 = vmatpush.msra.mxu3 %v692_v22  ;;  %v843_v22 = vld [vmem:[#allocation12 + $0x20] sm:$0xff] }
 0x17e   :  { %v608_v58 = vsub.f32 %v1369_v17, %v604_v54  ;;  %v790_v54 = vld [vmem:[#allocation9 + $0x100] sm:$0xff] }
 0x17f   :  { %770 = vmatpush.msra.mxu3 %v691_v50 }
 0x180   :  { %v1377_v63 = vadd.f32 1e-05, %v608_v58 }
 0x181   :  { %771 = vmatpush.msra.mxu3 %v690_v53  ;;  %v839_v53 = vld [vmem:[#allocation12] sm:$0xff] }
 0x182   :  { %v1016_v42 = vpop.eup %1015  ;;  %1017 = vrsqrt.f32 %v1377_v63  ;;  %vm618_vm7 = vweird.f32 %v1377_v63 }
 0x183   :  { %v623_v10 = vmul.f32 %v1016_v42, %v1371_v49  ;;  %vm629_vm3 = vweird.f32 %v1016_v42  ;;  %v792_v49 = vld [vmem:[#allocation9 + $0x110] sm:$0xff] }
 0x184   :  { %vm630_vm5 = vmor %vm628_vm4, %vm629_vm3  ;;  %819 = vmatpush.msrb.mxu0 %v792_v49  ;;  %v842_v49 = vld [vmem:[#allocation12 + $0x18] sm:$0xff] }
 0x185   :  { %v624_v14 = vmul.f32 %v1016_v42, %v623_v10 }
 0x186   :  { %820 = vmatpush.msrb.mxu0 %v791_v51  ;;  %v841_v51 = vld [vmem:[#allocation12 + $0x10] sm:$0xff] }
 0x187   :  { %v625_v20 = vmul.f32 0.5, %v624_v14 }
 0x188   :  { %v1018_v21 = vpop.eup %1017  ;;  %821 = vmatpush.msrb.mxu0 %v790_v54 }
 0x189   :  { %v626_v26 = vsub.f32 1.5, %v625_v20  ;;  %v613_v13 = vmul.f32 %v1018_v21, %v1377_v63  ;;  %vm619_vm6 = vweird.f32 %v1018_v21 }
 0x18a   :  { %vm620_vm8 = vmor %vm618_vm7, %vm619_vm6 }
 0x18b   :  { %v627_v2 = vmul.f32 %v1016_v42, %v626_v26  ;;  %v614_v3 = vmul.f32 %v1018_v21, %v613_v13 }
 0x18d   :  { %v631_v38 = vsel %vm630_vm5, %v1016_v42, %v627_v2  ;;  %v615_v39 = vmul.f32 0.5, %v614_v3  ;;  %v853_v2 = vld [vmem:[#allocation12 + $0x70] sm:$0xff]  ;;  %v852_v3 = vld [vmem:[#allocation12 + $0x68] sm:$0xff] }
 0x18e   :  { %635 = vst [vmem:[#allocation1 + $0x9] sm:$0xff] %v631_v38  ;;  %881 = vmatpush.msrb.mxu1 %v853_v2 }
 0x18f   :  { %v616_v44 = vsub.f32 1.5, %v615_v39  ;;  %v848_v39 = vld [vmem:[#allocation12 + $0x48] sm:$0xff] }
 0x190   :  { %882 = vmatpush.msrb.mxu1 %v852_v3 }
 0x191   :  { %v617_v32 = vmul.f32 %v1018_v21, %v616_v44  ;;  %v845_v44 = vld [vmem:[#allocation12 + $0x30] sm:$0xff] }
 0x192   :  { %883 = vmatpush.msrb.mxu1 %v851_v33 }
 0x193   :  { %v621_v52 = vsel %vm620_vm8, %v1018_v21, %v617_v32 }
 0x194   :  { %634 = vst [vmem:[#allocation1] sm:$0xff] %v621_v52  ;;  %884 = vmatpush.msrb.mxu1 %v850_v34  ;;  %v840_v52 = vld [vmem:[#allocation12 + $0x8] sm:$0xff] }
 0x196   :  { %885 = vmatpush.msrb.mxu1 %v849_v37 }
 0x198   :  { %886 = vmatpush.msrb.mxu1 %v848_v39 }
 0x19a   :  { %887 = vmatpush.msrb.mxu1 %v847_v40 }
 0x19b   :  { %v637_v56 = vld [vmem:[#allocation1 + $0x1] ss:$9 sm:$0xff] }
 0x19c   :  { %v639_v57 = vmul.f32 %v637_v56, %v469_v55  ;;  %888 = vmatpush.msrb.mxu1 %v846_v43 }
 0x19e   :  { %v641_v58 = vperm.slane %v639_v57, 0  ;;  %v642_v59 = vperm.slane %v639_v57, 1  ;;  %889 = vmatpush.msrb.mxu1 %v845_v44  ;;  %v855_v44 = vld [vmem:[%s1433_s7] sm:$0x1]  ;;  %s1183_s7 = smov [#allocation13]  }
 0x1a0   :  { %v646_v60 = vmul.f32 %v642_v59, %v1364_v35  ;;  %v645_v63 = vmul.f32 %v641_v58, %v1369_v17  ;;  %v653_v42 = vmul.f32 %v641_v58, %v1317_v30  ;;  %v655_v6 = vmul.f32 %v641_v58, %v1314_v27  ;;  %890 = vmatpush.msrb.mxu1 %v844_v48 }
 0x1a1   :  { %v657_v7 = vmul.f32 %v641_v58, %v1319_v31  ;;  %v659_v9 = vmul.f32 %v641_v58, %v1337_v45  ;;  %v654_v11 = vmul.f32 %v642_v59, %v1340_v46  ;;  %v656_v12 = vmul.f32 %v642_v59, %v1334_v41 }
 0x1a2   :  { %v649_v0 = vrot.slane %v646_v60, 7  ;;  %v658_v17 = vmul.f32 %v642_v59, %v1342_v47  ;;  %v660_v14 = vmul.f32 %v642_v59, %v1357_v62  ;;  %891 = vmatpush.msrb.mxu1 %v843_v22  ;;  %v856_v22 = vld [vmem:[%s1434_s8] sm:$0x1]  ;;  %s955_s8 = sshll.u32 %s1183_s7, 4  ;;  %s956_s8 = int_to_ptr.vmem [resolvable:$true] %s955_s8 }
 0x1a4   :  { %v650_v4 = vsel %vm515_vm2, %v645_v63, %v649_v0  ;;  %892 = vmatpush.msrb.mxu1 %v842_v49 }
 0x1a5   :  { %v652_v5 = vsub.f32 %v470_v61, %v650_v4 }
 0x1a6   :  { %893 = vmatpush.msrb.mxu1 %v841_v51 }
 0x1a7   :  { %v662_v10 = vperm.slane %v652_v5, 0  ;;  %v663_v35 = vperm.slane %v652_v5, 1 }
 0x1a8   :  { %894 = vmatpush.msrb.mxu1 %v840_v52 }
 0x1a9   :  { %v666_v15 = vadd.f32 %v662_v10, %v653_v42  ;;  %v668_v16 = vadd.f32 %v662_v10, %v655_v6  ;;  %v670_v18 = vadd.f32 %v662_v10, %v657_v7  ;;  %v672_v30 = vadd.f32 %v662_v10, %v659_v9 }
 0x1aa   :  { %v1401_v19 = vadd.f32 %v663_v35, %v654_v11  ;;  %v1403_v27 = vadd.f32 %v663_v35, %v656_v12  ;;  %v1405_v31 = vadd.f32 %v663_v35, %v658_v17  ;;  %v1407_v45 = vadd.f32 %v663_v35, %v660_v14  ;;  %895 = vmatpush.msrb.mxu1 %v839_v53 }
 0x1ab   :  { %v674_v20 = vmax.f32 %v666_v15, 0.0  ;;  %v675_v46 = vmax.f32 %v668_v16, 0.0  ;;  %v676_v21 = vmax.f32 %v670_v18, 0.0  ;;  %v677_v41 = vmax.f32 %v672_v30, 0.0 }
 0x1ad   :  { %682 = vst [vmem:[#allocation3 + $0x1] sm:$0xff] %v674_v20  ;;  %743 = vmatmul.f32.vlgmr.msrb.gmra.mxu2 %v674_v20 }
 0x1ae   :  { %683 = vst [vmem:[#allocation3 + $0x9] sm:$0xff] %v675_v46 }
 0x1af   :  { %684 = vst [vmem:[#allocation3 + $0x19] sm:$0xff] %v676_v21 }
 0x1b0   :  { %685 = vst [vmem:[#allocation3 + $0x21] sm:$0xff] %v677_v41 }
 0x1b4   :  { %v686_v47 = vld [vmem:[#allocation3] sm:$0xff] }
 0x1b5   :  { %772 = vmatmul.f32.vlgmr.msra.gmra.mxu3 %v686_v47  ;;  %v785_v62 = vld [vmem:[#allocation3 + $0x2] sm:$0xff]  ;;  %746 = vmatmul.f32.gmra.mxu2 %v675_v46  ;;  %v786_v24 = vld [vmem:[#allocation3 + $0xa] sm:$0xff] }
 0x1b6   :  { %822 = vmatmul.f32.vlgmr.msrb.gmra.mxu0 %v785_v62  ;;  %v687_v23 = vld [vmem:[#allocation3 + $0x8] sm:$0xff]  ;;  %v688_v25 = vld [vmem:[#allocation3 + $0x18] sm:$0xff] }
 0x1b7   :  { %v787_v26 = vld [vmem:[#allocation3 + $0x1a] sm:$0xff]  ;;  %v788_v28 = vld [vmem:[#allocation3 + $0x22] sm:$0xff] }
 0x1b8   :  { %v689_v13 = vld [vmem:[#allocation3 + $0x20] sm:$0xff] }
 0x1bd   :  { %775 = vmatmul.f32.gmra.mxu3 %v687_v23  ;;  %749 = vmatmul.f32.gmra.mxu2 %v676_v21 }
 0x1be   :  { %825 = vmatmul.f32.gmra.mxu0 %v786_v24 }
 0x1c5   :  { %778 = vmatmul.f32.gmra.mxu3 %v688_v25  ;;  %752 = vmatmul.f32.gmra.mxu2 %v677_v41 }
 0x1c6   :  { %828 = vmatmul.f32.gmra.mxu0 %v787_v26 }
 0x1cd   :  { %781 = vmatmul.f32.gmra.mxu3 %v689_v13 }
 0x1ce   :  { %831 = vmatmul.f32.gmra.mxu0 %v788_v28 }
 0x230   :  { %v744_v36 = vpop.f32.mrf.mxu2 }
 0x233   :  { %v823_v38 = vpop.f32.mrf.mxu0 }
 0x238   :  { %v773_v8 = vpop.f32.mrf.mxu3  ;;  %v747_v1 = vpop.f32.mrf.mxu2 }
 0x239   :  { %v774_v58 = vadd.f32 %v773_v8, %v744_v36 }
 0x23b   :  { %v826_v32 = vpop.f32.mrf.mxu0  ;;  %v835_v61 = vadd.f32 %v823_v38, %v774_v58 }
 0x23d   :  { %v866_v42 = vmul.f32 %v835_v61, %v835_v61 }
 0x240   :  { %v776_v50 = vpop.f32.mrf.mxu3  ;;  %v750_v54 = vpop.f32.mrf.mxu2 }
 0x241   :  { %v777_v55 = vadd.f32 %v776_v50, %v747_v1 }
 0x243   :  { %v829_v56 = vpop.f32.mrf.mxu0  ;;  %v836_v60 = vadd.f32 %v826_v32, %v777_v55 }
 0x245   :  { %v867_v0 = vmul.f32 %v836_v60, %v836_v60  ;;  %v857_v6 = vadd.f32 %v836_v60, %v835_v61 }
 0x247   :  { %v870_v35 = vadd.f32 %v867_v0, %v866_v42 }
 0x248   :  { %v779_v57 = vpop.f32.mrf.mxu3  ;;  %v753_v4 = vpop.f32.mrf.mxu2 }
 0x249   :  { %v780_v59 = vadd.f32 %v779_v57, %v750_v54 }
 0x24b   :  { %v837_v63 = vadd.f32 %v829_v56, %v780_v59  ;;  %v832_v10 = vpop.f32.mrf.mxu0 }
 0x24d   :  { %v868_v7 = vmul.f32 %v837_v63, %v837_v63  ;;  %v858_v11 = vadd.f32 %v857_v6, %v837_v63 }
 0x24f   :  { %v871_v17 = vadd.f32 %v870_v35, %v868_v7 }
 0x250   :  { %v782_v5 = vpop.f32.mrf.mxu3 }
 0x251   :  { %v783_v9 = vadd.f32 %v782_v5, %v753_v4 }
 0x253   :  { %v838_v12 = vadd.f32 %v832_v10, %v783_v9 }
 0x255   :  { %v859_v14 = vadd.f32 %v858_v11, %v838_v12  ;;  %v869_v15 = vmul.f32 %v838_v12, %v838_v12 }
 0x257   :  { %v860_v16 = vrot.slane %v859_v14, 4  ;;  %v872_v18 = vadd.f32 %v871_v17, %v869_v15 }
 0x259   :  { %v861_v30 = vadd.f32 %v860_v16, %v859_v14  ;;  %v873_v20 = vrot.slane %v872_v18, 4 }
 0x25b   :  { %v862_v46 = vrot.slane %v861_v30, 2  ;;  %v874_v21 = vadd.f32 %v873_v20, %v872_v18 }
 0x25d   :  { %v863_v41 = vadd.f32 %v862_v46, %v861_v30  ;;  %v875_v47 = vrot.slane %v874_v21, 2 }
 0x25f   :  { %v864_v62 = vrot.slane %v863_v41, 1  ;;  %v876_v23 = vadd.f32 %v875_v47, %v874_v21 }
 0x261   :  { %v877_v24 = vrot.slane %v876_v23, 1  ;;  %v865_v25 = vadd.f32 %v864_v62, %v863_v41 }
 0x263   :  { %v878_v26 = vadd.f32 %v877_v24, %v876_v23 }
 0x265   :  { %v879_v13 = vsel %vm515_vm2, %v865_v25, %v878_v26 }
 0x266   :  { %896 = vmatmul.f32.vlgmr.msrb.gmra.mxu1 %v879_v13 }
 0x2e3   :  { %v897_v28 = vpop.f32.mrf.mxu1 }
 0x2e4   :  { %v900_v29 = vmul.f32 0.001953125, %v897_v28 }
 0x2e6   :  { %v901_v2 = vmul.f32 %v900_v29, %v900_v29 }
 0x2e8   :  { %v903_v3 = vrot.slane %v901_v2, 7 }
 0x2ea   :  { %v905_v33 = vsub.f32 %v900_v29, %v903_v3 }
 0x2ec   :  { %v906_v34 = vadd.f32 1e-05, %v905_v33 }
 0x2ee   :  { %1019 = vrsqrt.f32 %v906_v34  ;;  %vm913_vm10 = vweird.f32 %v906_v34 }
 0x2f4   :  { %v1020_v36 = vpop.eup %1019 }
 0x2f5   :  { %v908_v37 = vmul.f32 %v1020_v36, %v906_v34  ;;  %vm914_vm9 = vweird.f32 %v1020_v36 }
 0x2f6   :  { %vm915_vm11 = vmor %vm913_vm10, %vm914_vm9 }
 0x2f7   :  { %v909_v38 = vmul.f32 %v1020_v36, %v908_v37 }
 0x2f9   :  { %v910_v39 = vmul.f32 0.5, %v909_v38 }
 0x2fb   :  { %v911_v40 = vsub.f32 1.5, %v910_v39 }
 0x2fd   :  { %v912_v8 = vmul.f32 %v1020_v36, %v911_v40 }
 0x2ff   :  { %v916_v43 = vsel %vm915_vm11, %v1020_v36, %v912_v8 }
 0x300   :  { %918 = vst [vmem:[#allocation1] sm:$0xff] %v916_v43 }
 0x307   :  { %v920_v48 = vld [vmem:[#allocation1 + $0x1] ss:$9 sm:$0xff] }
 0x308   :  { %v922_v1 = vmul.f32 %v920_v48, %v855_v44 }
 0x30a   :  { %v923_v32 = vmul.f32 %v922_v1, %v900_v29  ;;  %v926_v49 = vperm.slane %v922_v1, 0 }
 0x30c   :  { %v924_v50 = vsub.f32 %v856_v22, %v923_v32  ;;  %v928_v51 = vmul.f32 %v926_v49, %v835_v61  ;;  %v929_v52 = vmul.f32 %v926_v49, %v836_v60  ;;  %v930_v53 = vmul.f32 %v926_v49, %v837_v63 }
 0x30d   :  { %v931_v54 = vmul.f32 %v926_v49, %v838_v12 }
 0x30e   :  { %v933_v55 = vperm.slane %v924_v50, 0 }
 0x310   :  { %v935_v56 = vadd.f32 %v933_v55, %v928_v51  ;;  %v936_v57 = vadd.f32 %v933_v55, %v929_v52  ;;  %v937_v58 = vadd.f32 %v933_v55, %v930_v53  ;;  %v938_v59 = vadd.f32 %v933_v55, %v931_v54 }
 0x312   :  { %v939_v0 = vadd.f32 %v935_v56, %v1401_v19  ;;  %v940_v4 = vadd.f32 %v936_v57, %v1403_v27  ;;  %v941_v5 = vadd.f32 %v937_v58, %v1405_v31  ;;  %v942_v42 = vadd.f32 %v938_v59, %v1407_v45 }
 0x314   :  { %v943_v6 = vmax.f32 %v939_v0, 0.0  ;;  %v944_v7 = vmax.f32 %v940_v4, 0.0  ;;  %v945_v9 = vmax.f32 %v941_v5, 0.0  ;;  %v946_v60 = vmax.f32 %v942_v42, 0.0 }
 0x316   :  { %947 = vst [vmem:[#allocation13] sm:$0xff] %v943_v6 }
 0x317   :  { %948 = vst [vmem:[#allocation13 + $0x8] sm:$0xff] %v944_v7 }
 0x318   :  { %949 = vst [vmem:[#allocation13 + $0x10] sm:$0xff] %v945_v9 }
 0x319   :  { %950 = vst [vmem:[#allocation13 + $0x18] sm:$0xff] %v946_v60 }
 0x31a   :  { %963 = dma.vmem_to_hbm [thread:$0]  %s956_s8, 512, %s958_s20, [#allocation6], %s1178_s27, %s1178_s27, %s1179_s28  }
 0x31b   :  { %1171 = dma.done.wait [#allocation6], 512  }
 0x31c   :  { %1172 = vsyncadd [#allocation6], 4294966784 }
 0x31d   :  { %968 = vsyncpa [#allocation5], 1 }
 0x31e   :  { %969 = vsyncpa [#allocation8], 1 }
 0x31f   :  { %970 = vsyncpa [#allocation11], 1 }
 0x320   :  { %971 = vsyncpa [#allocation6], 1 }

</bundles_post_ra>
